<compile_context>
chip_gen: v6e
topology: v6e:2x2x1
jax: 0.10.0
libtpu: 0.0.40
codegen_flags: <defaults>
</compile_context>

<pallas_src>
import jax
import jax.numpy as jnp
from jax import lax
from jax.experimental import pallas as pl
from jax.experimental.pallas import tpu as pltpu


VMEM_LIMIT_BYTES = 48 * 1024 * 1024   # <= physical VMEM on v5e/v6e (128 MiB) and v7x (64 MiB)
TILE_VMEM_BUDGET = 12 * 1024 * 1024   # target for the double-buffered per-step working set


# ----------------------------------------------------------------------------
# Pallas kernels
# ----------------------------------------------------------------------------
def _conv1_kernel(x_ref, w1_ref, b1_ref, c1_ref):
    """conv1 (1x1), channel-major: c1^T[f, tm] = W1[f, C] @ x^T[C, tm] + b1."""
    c1 = jnp.dot(w1_ref[...], x_ref[0], preferred_element_type=jnp.float32)
    c1_ref[0] = (c1 + b1_ref[...]).astype(c1_ref.dtype)


def _lowres_kernel(q_ref, w2_ref, b2_ref, wm_ref, bm_ref, w3_ref, b3_ref,
                   w3p_ref, b3p_ref, o_ref):
    """Fused low-res branch for one batch element:
         conv2(s2) -> maxpool(7,3) -> conv_max+relu -> conv3+relu -> conv3_.

    q_ref   : (1, 49, PP*f*9)  c1_ patches, one row per 7x7 pooling offset
    w2_ref  : (PP*f*9, f*PP)   conv2 weights as a block matrix (pool pos on columns)
    wm/w3/w3p : (f*PP, f*PP)   dense equivalents of the 3x3 pad-1 convs on PHxPW

    One MXU push covers all 49 pooling offsets; the maxpool is a single sublane
    max-reduction of the (49, f*PP) result (max commutes with the +b2 bias).
    """
    r = jnp.dot(q_ref[0], w2_ref[...], preferred_element_type=jnp.float32)  # (49, f*PP)
    v = jnp.max(r, axis=0, keepdims=True) + b2_ref[...]                      # (1, f*PP)
    v = jnp.maximum(jnp.dot(v, wm_ref[...], preferred_element_type=jnp.float32)
                    + bm_ref[...], 0.0)                                      # conv_max + relu
    v = jnp.maximum(jnp.dot(v, w3_ref[...], preferred_element_type=jnp.float32)
                    + b3_ref[...], 0.0)                                      # conv3 + relu
    v = jnp.dot(v, w3p_ref[...], preferred_element_type=jnp.float32) + b3p_ref[...]
    o_ref[0] = v.astype(o_ref.dtype)


def _gate_kernel(x_ref, u4_ref, ut_ref, w4f_ref, b_ref, o_ref):
    """Fused tail with conv1/conv_f/conv4 folded:
         c4 = (w4@c3) @ ut + (w4@wf@w1) @ x + bfold ;  out = x * sigmoid(c4)."""
    x = x_ref[0]                                                             # (C, tm)
    c4 = (jnp.dot(u4_ref[0], ut_ref[...], preferred_element_type=jnp.float32)
          + jnp.dot(w4f_ref[...], x, preferred_element_type=jnp.float32)
          + b_ref[...])
    o_ref[0] = (x * jax.nn.sigmoid(c4)).astype(o_ref.dtype)


# ----------------------------------------------------------------------------
# Plain-JAX glue (tiny, shape-static)
# ----------------------------------------------------------------------------
def _pick_tile(hw, bytes_per_lane):
    """Largest lane-aligned tile dividing HW whose double-buffered working set
    stays inside the VMEM budget on every TPU generation."""
    for t in (4096, 2048, 1024, 512, 256, 128):
        if hw % t == 0 and 2 * t * bytes_per_lane <= TILE_VMEM_BUDGET:
            return t
    return hw   # full-extent fallback for non-128-aligned HW (masked stores)


def _interp_matrix(out_size, in_size):
    """PyTorch bilinear (align_corners=False) 1-D interpolation matrix (out, in)."""
    scale = in_size / out_size
    i = jnp.arange(out_size, dtype=jnp.float32)
    src = jnp.maximum((i + 0.5) * scale - 0.5, 0.0)
    i0 = jnp.minimum(jnp.floor(src).astype(jnp.int32), in_size - 1)
    i1 = jnp.minimum(i0 + 1, in_size - 1)
    l1 = src - i0.astype(jnp.float32)
    l0 = 1.0 - l1
    A = jnp.zeros((out_size, in_size), jnp.float32)
    A = A.at[jnp.arange(out_size), i0].add(l0)
    A = A.at[jnp.arange(out_size), i1].add(l1)
    return A


def _conv3x3_same_as_dense(w, ph, pw):
    """w (Co,Ci,3,3) -> dense operator D (Ci*ph*pw, Co*ph*pw) for a 3x3 pad-1 conv
    on a (ph, pw) grid, applied as out[n, co*PP+po] = (v @ D)[n, co*PP+po]."""
    Co, Ci = w.shape[0], w.shape[1]
    yo = jnp.arange(ph); yi = jnp.arange(ph)
    xo = jnp.arange(pw); xi = jnp.arange(pw)
    dy = yi[None, :] - yo[:, None] + 1            # (yo, yi)
    dx = xi[None, :] - xo[:, None] + 1            # (xo, xi)
    valid = (((dy >= 0) & (dy <= 2))[:, :, None, None]
             & ((dx >= 0) & (dx <= 2))[None, None, :, :])
    dyc = jnp.clip(dy, 0, 2)
    dxc = jnp.clip(dx, 0, 2)
    g = w[:, :, dyc[:, :, None, None], dxc[None, None, :, :]]   # (Co,Ci,yo,yi,xo,xi)
    g = g * valid.astype(w.dtype)
    g = jnp.transpose(g, (1, 3, 5, 0, 2, 4))                    # (Ci,yi,xi,Co,yo,xo)
    return g.reshape(Ci * ph * pw, Co * ph * pw)


def _full_spec(shape):
    nd = len(shape)
    return pl.BlockSpec(shape, lambda *_, nd=nd: (0,) * nd)


# ----------------------------------------------------------------------------
# ESA forward
# ----------------------------------------------------------------------------
def esa_forward(x, params):
    N, C, H, W = x.shape
    f = params["w1"].shape[0]
    HW = H * W

    H2 = (H - 3) // 2 + 1                 # conv2 output size (stride 2, no pad)
    W2 = (W - 3) // 2 + 1
    if H2 < 7 or W2 < 7:
        raise ValueError("ESA low-res branch needs conv2 output >= 7x7; input too small.")
    PH = (H2 - 7) // 3 + 1                # maxpool(7, 3) output size
    PW = (W2 - 7) // 3 + 1
    PP = PH * PW

    # tile sized against kernel C's per-lane bytes (x tile + out tile + ut tile)
    tm = _pick_tile(HW, 4 * (2 * C + PP))
    grid = (HW // tm, N)                  # N fastest -> ut tile DMA'd once per spatial tile

    cparams = pltpu.CompilerParams(
        dimension_semantics=("parallel", "parallel"),
        vmem_limit_bytes=VMEM_LIMIT_BYTES)

    x2 = x.reshape(N, C, HW).astype(jnp.float32)   # channel-major, spatial on lanes

    # ---------------- kernel A: conv1 (1x1) ----------------
    w1 = params["w1"].reshape(f, C).astype(jnp.float32)
    b1c = params["b1"].reshape(f, 1).astype(jnp.float32)
    c1 = pl.pallas_call(
        _conv1_kernel,
        out_shape=jax.ShapeDtypeStruct((N, f, HW), jnp.float32),
        grid=grid,
        in_specs=[
            pl.BlockSpec((1, C, tm), lambda j, n: (n, 0, j)),
            pl.BlockSpec((f, C), lambda j, n: (0, 0)),
            pl.BlockSpec((f, 1), lambda j, n: (0, 0)),
        ],
        out_specs=pl.BlockSpec((1, f, tm), lambda j, n: (n, 0, j)),
        compiler_params=cparams,
    )(x2, w1, b1c)

    # ---------------- glue: patch extraction via strided slices (no XLA gather) ----------------
    c14 = c1.reshape(N, f, H, W)
    # (1) 3x3 stride-2 conv2 input taps at every conv2-output position.
    pats = []
    for di in range(3):
        for dj in range(3):
            pats.append(lax.slice(
                c14, (0, 0, di, dj),
                (N, f, di + 2 * (H2 - 1) + 1, dj + 2 * (W2 - 1) + 1),
                (1, 1, 2, 2)))                       # (N, f, H2, W2)
    P = jnp.stack(pats, axis=2)                       # (N, f, 9, H2, W2), 9 = di*3+dj
    # (2) 7x7 stride-3 maxpool windows over the conv2-output grid.
    qs = []
    for u in range(7):
        for v in range(7):
            qs.append(lax.slice(
                P, (0, 0, 0, u, v),
                (N, f, 9, u + 3 * (PH - 1) + 1, v + 3 * (PW - 1) + 1),
                (1, 1, 1, 3, 3)))                     # (N, f, 9, PH, PW)
    Q = jnp.stack(qs, axis=1)                         # (N, 49, f, 9, PH, PW)
    q = jnp.transpose(Q, (0, 1, 4, 5, 2, 3)).reshape(N, 49, PP * f * 9)

    # conv2 weights as a block matrix keeping the pooling position on the columns
    w2m = params["w2"].reshape(f, f * 9).astype(jnp.float32)
    w2b = jnp.einsum("pq,cj->pjcq", jnp.eye(PP, dtype=jnp.float32), w2m)
    w2b = w2b.reshape(PP * f * 9, f * PP)
    b2r = jnp.repeat(params["b2"].astype(jnp.float32), PP)[None, :]

    wmT = _conv3x3_same_as_dense(params["wmax"].astype(jnp.float32), PH, PW)
    bmr = jnp.repeat(params["bmax"].astype(jnp.float32), PP)[None, :]
    w3T = _conv3x3_same_as_dense(params["w3"].astype(jnp.float32), PH, PW)
    b3r = jnp.repeat(params["b3"].astype(jnp.float32), PP)[None, :]
    w3pT = _conv3x3_same_as_dense(params["w3_"].astype(jnp.float32), PH, PW)
    b3pr = jnp.repeat(params["b3_"].astype(jnp.float32), PP)[None, :]

    # ---------------- kernel B: fused low-res branch (one MXU push per batch) ----------------
    fPP = f * PP
    Kq = PP * f * 9
    c3flat = pl.pallas_call(
        _lowres_kernel,
        out_shape=jax.ShapeDtypeStruct((N, 1, fPP), jnp.float32),
        grid=(N,),
        in_specs=[
            pl.BlockSpec((1, 49, Kq), lambda n: (n, 0, 0)),
            _full_spec((Kq, fPP)),
            _full_spec((1, fPP)),
            _full_spec((fPP, fPP)),
            _full_spec((1, fPP)),
            _full_spec((fPP, fPP)),
            _full_spec((1, fPP)),
            _full_spec((fPP, fPP)),
            _full_spec((1, fPP)),
        ],
        out_specs=pl.BlockSpec((1, 1, fPP), lambda n: (n, 0, 0)),
        compiler_params=pltpu.CompilerParams(
            dimension_semantics=("parallel",),
            vmem_limit_bytes=VMEM_LIMIT_BYTES),
    )(q, w2b, b2r, wmT, bmr, w3T, b3r, w3pT, b3pr)
    c3c = c3flat.reshape(N, f, PP)

    # ---------------- glue: fold conv1/conv_f/conv4, build upsample operator ----------------
    wf = params["wf"].reshape(f, f).astype(jnp.float32)
    bf = params["bf"].astype(jnp.float32)
    w4 = params["w4"].reshape(C, f).astype(jnp.float32)
    b4 = params["b4"].astype(jnp.float32)
    b1v = params["b1"].astype(jnp.float32)

    w4f = w4 @ wf @ w1                                        # (C, C)  conv4∘conv_f∘conv1
    bfold = (w4 @ (wf @ b1v + bf) + b4).reshape(C, 1)         # folded bias
    u4 = jnp.einsum("cf,nfp->ncp", w4, c3c)                   # conv4 pulled through upsample

    A = _interp_matrix(H, PH)                                 # (H, PH)
    B = _interp_matrix(W, PW)                                 # (W, PW)
    ut = (A[:, None, :, None] * B[None, :, None, :]).reshape(HW, PP).T   # (PP, HW)

    # ---------------- kernel C: upsample + folded 1x1 convs + sigmoid + gate ----------------
    out = pl.pallas_call(
        _gate_kernel,
        out_shape=jax.ShapeDtypeStruct((N, C, HW), jnp.float32),
        grid=grid,
        in_specs=[
            pl.BlockSpec((1, C, tm), lambda j, n: (n, 0, j)),
            pl.BlockSpec((1, C, PP), lambda j, n: (n, 0, 0)),
            pl.BlockSpec((PP, tm), lambda j, n: (0, j)),
            pl.BlockSpec((C, C), lambda j, n: (0, 0)),
            pl.BlockSpec((C, 1), lambda j, n: (0, 0)),
        ],
        out_specs=pl.BlockSpec((1, C, tm), lambda j, n: (n, 0, j)),
        compiler_params=cparams,
    )(x2, u4, ut, w4f, bfold)

    return out.reshape(N, C, H, W)


# ----------------------------------------------------------------------------
# Deterministic parameter init (synthetic weights, PyTorch OIHW layout)
# ----------------------------------------------------------------------------
def init_params(key, n_feats):
    f = n_feats // 4
    keys = jax.random.split(key, 14)

    def w(k, shape):
        return jax.random.normal(k, shape, jnp.float32) * 0.1

    return {
        "w1": w(keys[0], (f, n_feats, 1, 1)), "b1": w(keys[1], (f,)),
        "wf": w(keys[2], (f, f, 1, 1)),       "bf": w(keys[3], (f,)),
        "wmax": w(keys[4], (f, f, 3, 3)),     "bmax": w(keys[5], (f,)),
        "w2": w(keys[6], (f, f, 3, 3)),       "b2": w(keys[7], (f,)),
        "w3": w(keys[8], (f, f, 3, 3)),       "b3": w(keys[9], (f,)),
        "w3_": w(keys[10], (f, f, 3, 3)),     "b3_": w(keys[11], (f,)),
        "w4": w(keys[12], (n_feats, f, 1, 1)), "b4": w(keys[13], (n_feats,)),
    }


if __name__ == "__main__":
    n_feats = 16          # f = 4
    N, H, W = 2, 32, 32   # conv2 -> 15x15, maxpool(7,3) -> 3x3, bilinear -> 32x32

    key = jax.random.PRNGKey(0)
    k_x, k_p = jax.random.split(key)
    x = jax.random.normal(k_x, (N, n_feats, H, W), jnp.float32)
    params = init_params(k_p, n_feats)

    out = jax.jit(esa_forward)(x, params)
    out = jax.block_until_ready(out)
    assert out.shape == x.shape and out.dtype == jnp.float32
    assert bool(jnp.all(jnp.isfinite(out)))
    print("KERNEL_OK")
</pallas_src>

<mosaic_0001>
module attributes {stable_mosaic.version = 11 : i64} {
  func.func private @main(%arg0: i32) attributes {dimension_semantics = [#tpu.dimension_semantics<core_parallel>], iteration_bounds = array<i64: 2>, tpu.core_type = #tpu.core_type<sc_scalar_subcore>, window_params = []} {
    return
  }
}

module attributes {stable_mosaic.version = 11 : i64} {
  func.func private @main(%arg0: i32) attributes {dimension_semantics = [#tpu.dimension_semantics<core_parallel>], iteration_bounds = array<i64: 2>, tpu.core_type = #tpu.core_type<sc_scalar_subcore>, window_params = []} {
    return
  }
}

module attributes {stable_mosaic.version = 11 : i64} {
  func.func @_conv1_kernel(%arg0: i32, %arg1: i32, %arg2: memref<1x16x1024xf32, #tpu.memory_space<vmem>>, %arg3: memref<4x16xf32, #tpu.memory_space<vmem>>, %arg4: memref<4x1xf32, #tpu.memory_space<vmem>>, %arg5: memref<1x4x1024xf32, #tpu.memory_space<vmem>>) attributes {dimension_semantics = [#tpu.dimension_semantics<parallel>, #tpu.dimension_semantics<parallel>], iteration_bounds = array<i64: 1, 2>, scalar_prefetch = 0 : i64, scratch_operands = 0 : i64, tpu.core_type = #tpu.core_type<tc>, window_params = [{transform_indices = @transform_0, window_bounds = array<i64: 1, 16, 1024>}, {pipeline_mode = #tpu.pipeline_mode<synchronous>, transform_indices = @transform_1, window_bounds = array<i64: 4, 16>}, {pipeline_mode = #tpu.pipeline_mode<synchronous>, transform_indices = @transform_2, window_bounds = array<i64: 4, 1>}, {transform_indices = @transform_3, window_bounds = array<i64: 1, 4, 1024>}]} {
    %c0 = arith.constant 0 : index
    %c0_0 = arith.constant 0 : index
    %0 = vector.load %arg3[%c0, %c0_0] : memref<4x16xf32, #tpu.memory_space<vmem>>, vector<4x16xf32>
    %c0_1 = arith.constant 0 : index
    %c0_2 = arith.constant 0 : index
    %c0_3 = arith.constant 0 : index
    %1 = vector.load %arg2[%c0_1, %c0_2, %c0_3] : memref<1x16x1024xf32, #tpu.memory_space<vmem>>, vector<1x16x1024xf32>
    %2 = vector.shape_cast %1 : vector<1x16x1024xf32> to vector<16x1024xf32>
    %cst = arith.constant dense<0.000000e+00> : vector<4x1024xf32>
    %3 = tpu.matmul %0, %2, %cst {dimension_numbers = #tpu.dot_dimension_numbers<[1], [0], [0], [1], [0, 0, 1, 1], [], []>} : vector<4x16xf32>, vector<16x1024xf32>, vector<4x1024xf32> -> vector<4x1024xf32>
    %c0_4 = arith.constant 0 : index
    %c0_5 = arith.constant 0 : index
    %4 = vector.load %arg4[%c0_4, %c0_5] : memref<4x1xf32, #tpu.memory_space<vmem>>, vector<4x1xf32>
    %5 = vector.broadcast %4 : vector<4x1xf32> to vector<4x1024xf32>
    %6 = arith.addf %3, %5 : vector<4x1024xf32>
    %c0_6 = arith.constant 0 : index
    %c0_7 = arith.constant 0 : index
    %c0_8 = arith.constant 0 : index
    %7 = vector.load %arg5[%c0_6, %c0_7, %c0_8] : memref<1x4x1024xf32, #tpu.memory_space<vmem>>, vector<1x4x1024xf32>
    %8 = vector.shape_cast %7 : vector<1x4x1024xf32> to vector<4x1024xf32>
    %9 = vector.shape_cast %6 : vector<4x1024xf32> to vector<1x4x1024xf32>
    tpu.vector_store %arg5[%c0_6, %c0_7, %c0_8], %9 {strides = array<i32>} : memref<1x4x1024xf32, #tpu.memory_space<vmem>>, vector<1x4x1024xf32>,
    return
  }
  func.func @transform_0(%arg0: i32, %arg1: i32) -> (i32, i32, i32) {
    %c0_i32 = arith.constant 0 : i32
    %c0_i32_0 = arith.constant 0 : i32
    return %arg1, %c0_i32, %arg0 : i32, i32, i32
  }
  func.func @transform_1(%arg0: i32, %arg1: i32) -> (i32, i32) {
    %c0_i32 = arith.constant 0 : i32
    %c0_i32_0 = arith.constant 0 : i32
    %c0_i32_1 = arith.constant 0 : i32
    return %c0_i32, %c0_i32_0 : i32, i32
  }
  func.func @transform_2(%arg0: i32, %arg1: i32) -> (i32, i32) {
    %c0_i32 = arith.constant 0 : i32
    %c0_i32_0 = arith.constant 0 : i32
    %c0_i32_1 = arith.constant 0 : i32
    return %c0_i32, %c0_i32_0 : i32, i32
  }
  func.func @transform_3(%arg0: i32, %arg1: i32) -> (i32, i32, i32) {
    %c0_i32 = arith.constant 0 : i32
    %c0_i32_0 = arith.constant 0 : i32
    return %arg1, %c0_i32, %arg0 : i32, i32, i32
  }
}

module attributes {stable_mosaic.version = 11 : i64} {
  func.func @_lowres_kernel(%arg0: i32, %arg1: memref<1x49x324xf32, #tpu.memory_space<vmem>>, %arg2: memref<324x36xf32, #tpu.memory_space<vmem>>, %arg3: memref<1x36xf32, #tpu.memory_space<vmem>>, %arg4: memref<36x36xf32, #tpu.memory_space<vmem>>, %arg5: memref<1x36xf32, #tpu.memory_space<vmem>>, %arg6: memref<36x36xf32, #tpu.memory_space<vmem>>, %arg7: memref<1x36xf32, #tpu.memory_space<vmem>>, %arg8: memref<36x36xf32, #tpu.memory_space<vmem>>, %arg9: memref<1x36xf32, #tpu.memory_space<vmem>>, %arg10: memref<1x1x36xf32, #tpu.memory_space<vmem>>) attributes {dimension_semantics = [#tpu.dimension_semantics<parallel>], iteration_bounds = array<i64: 2>, scalar_prefetch = 0 : i64, scratch_operands = 0 : i64, tpu.core_type = #tpu.core_type<tc>, window_params = [{transform_indices = @transform_0, window_bounds = array<i64: 1, 49, 324>}, {pipeline_mode = #tpu.pipeline_mode<synchronous>, transform_indices = @transform_1, window_bounds = array<i64: 324, 36>}, {pipeline_mode = #tpu.pipeline_mode<synchronous>, transform_indices = @transform_2, window_bounds = array<i64: 1, 36>}, {pipeline_mode = #tpu.pipeline_mode<synchronous>, transform_indices = @transform_3, window_bounds = array<i64: 36, 36>}, {pipeline_mode = #tpu.pipeline_mode<synchronous>, transform_indices = @transform_4, window_bounds = array<i64: 1, 36>}, {pipeline_mode = #tpu.pipeline_mode<synchronous>, transform_indices = @transform_5, window_bounds = array<i64: 36, 36>}, {pipeline_mode = #tpu.pipeline_mode<synchronous>, transform_indices = @transform_6, window_bounds = array<i64: 1, 36>}, {pipeline_mode = #tpu.pipeline_mode<synchronous>, transform_indices = @transform_7, window_bounds = array<i64: 36, 36>}, {pipeline_mode = #tpu.pipeline_mode<synchronous>, transform_indices = @transform_8, window_bounds = array<i64: 1, 36>}, {transform_indices = @transform_9, window_bounds = array<i64: 1, 1, 36>}]} {
    %c0 = arith.constant 0 : index
    %c0_0 = arith.constant 0 : index
    %c0_1 = arith.constant 0 : index
    %0 = vector.load %arg1[%c0, %c0_0, %c0_1] : memref<1x49x324xf32, #tpu.memory_space<vmem>>, vector<1x49x324xf32>
    %1 = vector.shape_cast %0 : vector<1x49x324xf32> to vector<49x324xf32>
    %c0_2 = arith.constant 0 : index
    %c0_3 = arith.constant 0 : index
    %2 = vector.load %arg2[%c0_2, %c0_3] : memref<324x36xf32, #tpu.memory_space<vmem>>, vector<324x36xf32>
    %cst = arith.constant dense<0.000000e+00> : vector<49x36xf32>
    %3 = tpu.matmul %1, %2, %cst {dimension_numbers = #tpu.dot_dimension_numbers<[1], [0], [0], [1], [0, 0, 1, 1], [], []>} : vector<49x324xf32>, vector<324x36xf32>, vector<49x36xf32> -> vector<49x36xf32>
    %cst_4 = arith.constant dense<0xFF800000> : vector<36xf32>
    %4 = vector.multi_reduction <maximumf>, %3, %cst_4 [0] : vector<49x36xf32> to vector<36xf32>
    %5 = vector.shape_cast %4 : vector<36xf32> to vector<1x36xf32>
    %c0_5 = arith.constant 0 : index
    %c0_6 = arith.constant 0 : index
    %6 = vector.load %arg3[%c0_5, %c0_6] : memref<1x36xf32, #tpu.memory_space<vmem>>, vector<1x36xf32>
    %7 = arith.addf %5, %6 : vector<1x36xf32>
    %c0_7 = arith.constant 0 : index
    %c0_8 = arith.constant 0 : index
    %8 = vector.load %arg4[%c0_7, %c0_8] : memref<36x36xf32, #tpu.memory_space<vmem>>, vector<36x36xf32>
    %cst_9 = arith.constant dense<0.000000e+00> : vector<1x36xf32>
    %9 = tpu.matmul %7, %8, %cst_9 {dimension_numbers = #tpu.dot_dimension_numbers<[1], [0], [0], [1], [0, 0, 1, 1], [], []>} : vector<1x36xf32>, vector<36x36xf32>, vector<1x36xf32> -> vector<1x36xf32>
    %c0_10 = arith.constant 0 : index
    %c0_11 = arith.constant 0 : index
    %10 = vector.load %arg5[%c0_10, %c0_11] : memref<1x36xf32, #tpu.memory_space<vmem>>, vector<1x36xf32>
    %11 = arith.addf %9, %10 : vector<1x36xf32>
    %cst_12 = arith.constant 0.000000e+00 : f32
    %12 = vector.broadcast %cst_12 : f32 to vector<1x36xf32>
    %13 = arith.maximumf %11, %12 : vector<1x36xf32>
    %c0_13 = arith.constant 0 : index
    %c0_14 = arith.constant 0 : index
    %14 = vector.load %arg6[%c0_13, %c0_14] : memref<36x36xf32, #tpu.memory_space<vmem>>, vector<36x36xf32>
    %cst_15 = arith.constant dense<0.000000e+00> : vector<1x36xf32>
    %15 = tpu.matmul %13, %14, %cst_15 {dimension_numbers = #tpu.dot_dimension_numbers<[1], [0], [0], [1], [0, 0, 1, 1], [], []>} : vector<1x36xf32>, vector<36x36xf32>, vector<1x36xf32> -> vector<1x36xf32>
    %c0_16 = arith.constant 0 : index
    %c0_17 = arith.constant 0 : index
    %16 = vector.load %arg7[%c0_16, %c0_17] : memref<1x36xf32, #tpu.memory_space<vmem>>, vector<1x36xf32>
    %17 = arith.addf %15, %16 : vector<1x36xf32>
    %cst_18 = arith.constant 0.000000e+00 : f32
    %18 = vector.broadcast %cst_18 : f32 to vector<1x36xf32>
    %19 = arith.maximumf %17, %18 : vector<1x36xf32>
    %c0_19 = arith.constant 0 : index
    %c0_20 = arith.constant 0 : index
    %20 = vector.load %arg8[%c0_19, %c0_20] : memref<36x36xf32, #tpu.memory_space<vmem>>, vector<36x36xf32>
    %cst_21 = arith.constant dense<0.000000e+00> : vector<1x36xf32>
    %21 = tpu.matmul %19, %20, %cst_21 {dimension_numbers = #tpu.dot_dimension_numbers<[1], [0], [0], [1], [0, 0, 1, 1], [], []>} : vector<1x36xf32>, vector<36x36xf32>, vector<1x36xf32> -> vector<1x36xf32>
    %c0_22 = arith.constant 0 : index
    %c0_23 = arith.constant 0 : index
    %22 = vector.load %arg9[%c0_22, %c0_23] : memref<1x36xf32, #tpu.memory_space<vmem>>, vector<1x36xf32>
    %23 = arith.addf %21, %22 : vector<1x36xf32>
    %c0_24 = arith.constant 0 : index
    %c0_25 = arith.constant 0 : index
    %c0_26 = arith.constant 0 : index
    %24 = vector.load %arg10[%c0_24, %c0_25, %c0_26] : memref<1x1x36xf32, #tpu.memory_space<vmem>>, vector<1x1x36xf32>
    %25 = vector.shape_cast %24 : vector<1x1x36xf32> to vector<1x36xf32>
    %26 = vector.shape_cast %23 : vector<1x36xf32> to vector<1x1x36xf32>
    tpu.vector_store %arg10[%c0_24, %c0_25, %c0_26], %26 {strides = array<i32>} : memref<1x1x36xf32, #tpu.memory_space<vmem>>, vector<1x1x36xf32>,
    return
  }
  func.func @transform_0(%arg0: i32) -> (i32, i32, i32) {
    %c0_i32 = arith.constant 0 : i32
    %c0_i32_0 = arith.constant 0 : i32
    %c0_i32_1 = arith.constant 0 : i32
    return %arg0, %c0_i32, %c0_i32_0 : i32, i32, i32
  }
  func.func @transform_1(%arg0: i32) -> (i32, i32) {
    %c0_i32 = arith.constant 0 : i32
    %c0_i32_0 = arith.constant 0 : i32
    %c0_i32_1 = arith.constant 0 : i32
    return %c0_i32, %c0_i32_0 : i32, i32
  }
  func.func @transform_2(%arg0: i32) -> (i32, i32) {
    %c0_i32 = arith.constant 0 : i32
    %c0_i32_0 = arith.constant 0 : i32
    %c0_i32_1 = arith.constant 0 : i32
    return %c0_i32, %c0_i32_0 : i32, i32
  }
  func.func @transform_3(%arg0: i32) -> (i32, i32) {
    %c0_i32 = arith.constant 0 : i32
    %c0_i32_0 = arith.constant 0 : i32
    %c0_i32_1 = arith.constant 0 : i32
    return %c0_i32, %c0_i32_0 : i32, i32
  }
  func.func @transform_4(%arg0: i32) -> (i32, i32) {
    %c0_i32 = arith.constant 0 : i32
    %c0_i32_0 = arith.constant 0 : i32
    %c0_i32_1 = arith.constant 0 : i32
    return %c0_i32, %c0_i32_0 : i32, i32
  }
  func.func @transform_5(%arg0: i32) -> (i32, i32) {
    %c0_i32 = arith.constant 0 : i32
    %c0_i32_0 = arith.constant 0 : i32
    %c0_i32_1 = arith.constant 0 : i32
    return %c0_i32, %c0_i32_0 : i32, i32
  }
  func.func @transform_6(%arg0: i32) -> (i32, i32) {
    %c0_i32 = arith.constant 0 : i32
    %c0_i32_0 = arith.constant 0 : i32
    %c0_i32_1 = arith.constant 0 : i32
    return %c0_i32, %c0_i32_0 : i32, i32
  }
  func.func @transform_7(%arg0: i32) -> (i32, i32) {
    %c0_i32 = arith.constant 0 : i32
    %c0_i32_0 = arith.constant 0 : i32
    %c0_i32_1 = arith.constant 0 : i32
    return %c0_i32, %c0_i32_0 : i32, i32
  }
  func.func @transform_8(%arg0: i32) -> (i32, i32) {
    %c0_i32 = arith.constant 0 : i32
    %c0_i32_0 = arith.constant 0 : i32
    %c0_i32_1 = arith.constant 0 : i32
    return %c0_i32, %c0_i32_0 : i32, i32
  }
  func.func @transform_9(%arg0: i32) -> (i32, i32, i32) {
    %c0_i32 = arith.constant 0 : i32
    %c0_i32_0 = arith.constant 0 : i32
    %c0_i32_1 = arith.constant 0 : i32
    return %arg0, %c0_i32, %c0_i32_0 : i32, i32, i32
  }
}

module attributes {stable_mosaic.version = 11 : i64} {
  func.func @_gate_kernel(%arg0: i32, %arg1: i32, %arg2: memref<1x16x1024xf32, #tpu.memory_space<vmem>>, %arg3: memref<1x16x9xf32, #tpu.memory_space<vmem>>, %arg4: memref<9x1024xf32, #tpu.memory_space<vmem>>, %arg5: memref<16x16xf32, #tpu.memory_space<vmem>>, %arg6: memref<16x1xf32, #tpu.memory_space<vmem>>, %arg7: memref<1x16x1024xf32, #tpu.memory_space<vmem>>) attributes {dimension_semantics = [#tpu.dimension_semantics<parallel>, #tpu.dimension_semantics<parallel>], iteration_bounds = array<i64: 1, 2>, scalar_prefetch = 0 : i64, scratch_operands = 0 : i64, tpu.core_type = #tpu.core_type<tc>, window_params = [{transform_indices = @transform_0, window_bounds = array<i64: 1, 16, 1024>}, {transform_indices = @transform_1, window_bounds = array<i64: 1, 16, 9>}, {transform_indices = @transform_2, window_bounds = array<i64: 9, 1024>}, {pipeline_mode = #tpu.pipeline_mode<synchronous>, transform_indices = @transform_3, window_bounds = array<i64: 16, 16>}, {pipeline_mode = #tpu.pipeline_mode<synchronous>, transform_indices = @transform_4, window_bounds = array<i64: 16, 1>}, {transform_indices = @transform_5, window_bounds = array<i64: 1, 16, 1024>}]} {
    %c0 = arith.constant 0 : index
    %c0_0 = arith.constant 0 : index
    %c0_1 = arith.constant 0 : index
    %0 = vector.load %arg2[%c0, %c0_0, %c0_1] : memref<1x16x1024xf32, #tpu.memory_space<vmem>>, vector<1x16x1024xf32>
    %1 = vector.shape_cast %0 : vector<1x16x1024xf32> to vector<16x1024xf32>
    %c0_2 = arith.constant 0 : index
    %c0_3 = arith.constant 0 : index
    %c0_4 = arith.constant 0 : index
    %2 = vector.load %arg3[%c0_2, %c0_3, %c0_4] : memref<1x16x9xf32, #tpu.memory_space<vmem>>, vector<1x16x9xf32>
    %3 = vector.shape_cast %2 : vector<1x16x9xf32> to vector<16x9xf32>
    %c0_5 = arith.constant 0 : index
    %c0_6 = arith.constant 0 : index
    %4 = vector.load %arg4[%c0_5, %c0_6] : memref<9x1024xf32, #tpu.memory_space<vmem>>, vector<9x1024xf32>
    %cst = arith.constant dense<0.000000e+00> : vector<16x1024xf32>
    %5 = tpu.matmul %3, %4, %cst {dimension_numbers = #tpu.dot_dimension_numbers<[1], [0], [0], [1], [0, 0, 1, 1], [], []>} : vector<16x9xf32>, vector<9x1024xf32>, vector<16x1024xf32> -> vector<16x1024xf32>
    %c0_7 = arith.constant 0 : index
    %c0_8 = arith.constant 0 : index
    %6 = vector.load %arg5[%c0_7, %c0_8] : memref<16x16xf32, #tpu.memory_space<vmem>>, vector<16x16xf32>
    %cst_9 = arith.constant dense<0.000000e+00> : vector<16x1024xf32>
    %7 = tpu.matmul %6, %1, %cst_9 {dimension_numbers = #tpu.dot_dimension_numbers<[1], [0], [0], [1], [0, 0, 1, 1], [], []>} : vector<16x16xf32>, vector<16x1024xf32>, vector<16x1024xf32> -> vector<16x1024xf32>
    %8 = arith.addf %5, %7 : vector<16x1024xf32>
    %c0_10 = arith.constant 0 : index
    %c0_11 = arith.constant 0 : index
    %9 = vector.load %arg6[%c0_10, %c0_11] : memref<16x1xf32, #tpu.memory_space<vmem>>, vector<16x1xf32>
    %10 = vector.broadcast %9 : vector<16x1xf32> to vector<16x1024xf32>
    %11 = arith.addf %8, %10 : vector<16x1024xf32>
    %12 = arith.negf %11 : vector<16x1024xf32>
    %13 = math.exp %12 : vector<16x1024xf32>
    %cst_12 = arith.constant 1.000000e+00 : f32
    %14 = vector.broadcast %cst_12 : f32 to vector<16x1024xf32>
    %15 = arith.addf %14, %13 : vector<16x1024xf32>
    %16 = arith.divf %14, %15 : vector<16x1024xf32>
    %17 = arith.mulf %1, %16 : vector<16x1024xf32>
    %c0_13 = arith.constant 0 : index
    %c0_14 = arith.constant 0 : index
    %c0_15 = arith.constant 0 : index
    %18 = vector.load %arg7[%c0_13, %c0_14, %c0_15] : memref<1x16x1024xf32, #tpu.memory_space<vmem>>, vector<1x16x1024xf32>
    %19 = vector.shape_cast %18 : vector<1x16x1024xf32> to vector<16x1024xf32>
    %20 = vector.shape_cast %17 : vector<16x1024xf32> to vector<1x16x1024xf32>
    tpu.vector_store %arg7[%c0_13, %c0_14, %c0_15], %20 {strides = array<i32>} : memref<1x16x1024xf32, #tpu.memory_space<vmem>>, vector<1x16x1024xf32>,
    return
  }
  func.func @transform_0(%arg0: i32, %arg1: i32) -> (i32, i32, i32) {
    %c0_i32 = arith.constant 0 : i32
    %c0_i32_0 = arith.constant 0 : i32
    return %arg1, %c0_i32, %arg0 : i32, i32, i32
  }
  func.func @transform_1(%arg0: i32, %arg1: i32) -> (i32, i32, i32) {
    %c0_i32 = arith.constant 0 : i32
    %c0_i32_0 = arith.constant 0 : i32
    %c0_i32_1 = arith.constant 0 : i32
    return %arg1, %c0_i32, %c0_i32_0 : i32, i32, i32
  }
  func.func @transform_2(%arg0: i32, %arg1: i32) -> (i32, i32) {
    %c0_i32 = arith.constant 0 : i32
    %c0_i32_0 = arith.constant 0 : i32
    return %c0_i32, %arg0 : i32, i32
  }
  func.func @transform_3(%arg0: i32, %arg1: i32) -> (i32, i32) {
    %c0_i32 = arith.constant 0 : i32
    %c0_i32_0 = arith.constant 0 : i32
    %c0_i32_1 = arith.constant 0 : i32
    return %c0_i32, %c0_i32_0 : i32, i32
  }
  func.func @transform_4(%arg0: i32, %arg1: i32) -> (i32, i32) {
    %c0_i32 = arith.constant 0 : i32
    %c0_i32_0 = arith.constant 0 : i32
    %c0_i32_1 = arith.constant 0 : i32
    return %c0_i32, %c0_i32_0 : i32, i32
  }
  func.func @transform_5(%arg0: i32, %arg1: i32) -> (i32, i32, i32) {
    %c0_i32 = arith.constant 0 : i32
    %c0_i32_0 = arith.constant 0 : i32
    return %arg1, %c0_i32, %arg0 : i32, i32, i32
  }
}

</mosaic_0001>

<bundles_post_ra>
// kernel: esa_forward.3
= control target key start
LH: loop header
LB: loop body
LE: loop exit
PB: predicated region body
PF: predicated region fallthrough
CT: control target
= control target key end

     0   :  { %s718_s12 = smov 0   ;;  %s720_s13 = smov 0   ;;  %s783_s0 = inlined_call_operand.vmem [shape: f32[2,16,1024], index: 0, kind: input, shape index: {}]   ;;  %s784_s1 = inlined_call_operand.vmem [shape: f32[4,16], index: 1, kind: input, shape index: {}]   ;;  %s785_s2 = inlined_call_operand.vmem [shape: f32[4,1], index: 2, kind: input, shape index: {}]   ;;  %s786_s3 = inlined_call_operand.vmem [shape: f32[2,4,1024], index: 3, kind: output, shape index: {}]  }
   0x1   :  { %s722_s14 = smov 0  }
   0x2 LB: > { %s22_s15 = sadd.s32 1, %s690_s13  ;;  %p632_p0 = scmp.ge.s32.totalorder %s694_s14, 1  ;;  %s694_s14 = sphi %s722_s14, %s13_s14   ;;  %s690_s13 = sphi %s720_s13, %s788_s13   ;;  %s686_s12 = sphi %s718_s12, %s787_s12  }
   0x3   : > { %p23_p1 = scmp.ge.s32.totalorder %s22_s15, 2  ;;  %p158_p2 = scmp.lt.s32.totalorder %s694_s14, 3 }
   0x5   : > { %s790_s15 = smov (%p23_p1, %s22_s15), 0  ;;  %p159_p3 = pnand %p632_p0, %p158_p2 }
   0x6   : > { %p191_p4 = scmp.lt.s32.totalorder (!%p159_p3), %s686_s12, 1 }
   0x7   : > { %162 = sbr.rel (%p159_p3) target bundleno = 226 (0xe2), region = 32 }
   0xc   : > { %v696_v0 = vmov 0.0   ;;  %v227_v1 = vld [vmem:[%s785_s2] sm:$0xf]  ;;  %s792_s12 = smov (!%p191_p4, %s686_s12), 1  ;;  %v697_v2 = vmov 0   ;;  %vm233_vm0 = vcmask 130048  }
   0xd   : > { %301 = vmatprep.mubr.f32.mxu0 %v696_v0  ;;  %372 = vmatprep.mubr.f32.mxu1 %v696_v0  ;;  %s643_s18 = sshll.u32 %s792_s12, 7  ;;  %v210_v11 = vld [vmem:[%s784_s1] sm:$0xf]  ;;  %s644_s24 = sshll.u32 %s792_s12, 5 }
   0xe   : > { %671 = vset.pattern.permute.xlu0 %v697_v2  ;;  %s745_s21 = scalar_lea.vmem %s783_s0, %s643_s18  ;;  %s208_s27 = scalar_lea.vmem %s786_s3, %s644_s24 }
   0xf   : > { %230 = vperm.xlu0 %671, %v227_v1   ;;  %v220_v3 = vld [vmem:[%s745_s21 + $0x48] sm:$0xff]  ;;  %v222_v4 = vld [vmem:[%s745_s21 + $0x58] sm:$0xff]  ;;  %v219_v5 = vld [vmem:[%s745_s21 + $0x40] sm:$0xff] }
  0x10   : > { %265 = vmatprep.subr.mxu0 %v220_v3  ;;  %336 = vmatprep.subr.mxu1 %v222_v4  ;;  %v221_v6 = vld [vmem:[%s745_s21 + $0x50] sm:$0xff]  ;;  %v212_v7 = vld [vmem:[%s745_s21 + $0x8] sm:$0xff]  ;;  %v214_v8 = vld [vmem:[%s745_s21 + $0x18] sm:$0xff] }
  0x11   : > { %266 = vmatpush1.msra.mxu0 %v219_v5  ;;  %337 = vmatpush1.msra.mxu1 %v221_v6  ;;  %v211_v9 = vld [vmem:[%s745_s21] sm:$0xff]  ;;  %v213_v10 = vld [vmem:[%s745_s21 + $0x10] sm:$0xff]  ;;  %v224_v12 = vld [vmem:[%s745_s21 + $0x68] sm:$0xff] }
  0x12   : > { %267 = vmatprep.subr.mxu0 %v212_v7  ;;  %338 = vmatprep.subr.mxu1 %v214_v8  ;;  %v226_v13 = vld [vmem:[%s745_s21 + $0x78] sm:$0xff]  ;;  %v223_v14 = vld [vmem:[%s745_s21 + $0x60] sm:$0xff]  ;;  %v225_v15 = vld [vmem:[%s745_s21 + $0x70] sm:$0xff] }
  0x13   : > { %268 = vmatpush1.msra.mxu0 %v211_v9  ;;  %339 = vmatpush1.msra.mxu1 %v213_v10  ;;  %v216_v16 = vld [vmem:[%s745_s21 + $0x28] sm:$0xff]  ;;  %v218_v17 = vld [vmem:[%s745_s21 + $0x38] sm:$0xff]  ;;  %v215_v18 = vld [vmem:[%s745_s21 + $0x20] sm:$0xff] }
  0x14   : > { %637 = vmatmul.mubr.msk.f32.vlgmr.msra.gmra.mxu0 %vm233_vm0, %v210_v11  ;;  %638 = vmatmul.mubr.msk.f32.vlgmr.msra.gmra.mxu1 %vm233_vm0, %v210_v11  ;;  %v217_v19 = vld [vmem:[%s745_s21 + $0x30] sm:$0xff] }
  0x15   : > { %407 = vmatprep.subr.mxu0 %v224_v12  ;;  %478 = vmatprep.subr.mxu1 %v226_v13 }
  0x16   : > { %408 = vmatpush1.msra.mxu0 %v223_v14  ;;  %479 = vmatpush1.msra.mxu1 %v225_v15 }
  0x17   : > { %409 = vmatprep.subr.mxu0 %v216_v16  ;;  %480 = vmatprep.subr.mxu1 %v218_v17 }
  0x18   : > { %410 = vmatpush1.msra.mxu0 %v215_v18  ;;  %443 = vmatprep.mubr.f32.mxu0 %v696_v0 }
  0x19   : > { %481 = vmatpush1.msra.mxu1 %v217_v19  ;;  %514 = vmatprep.mubr.f32.mxu1 %v696_v0 }
  0x1a   : > { %639 = vmatmul.mubr.msk.f32.vlgmr.msra.gmra.mxu0 %vm233_vm0, %v210_v11  ;;  %640 = vmatmul.mubr.msk.f32.vlgmr.msra.gmra.mxu1 %vm233_vm0, %v210_v11 }
  0x8a   : > { %v231_v20 = vpop.permute.xlu0 %230 }
  0xd4   : > { %v303_v21 = vpop.f32.mrf.mxu0  ;;  %v374_v22 = vpop.f32.mrf.mxu1 }
  0xd5   : > { %v304_v25 = vadd.f32 %v303_v21, %v231_v20  ;;  %v375_v27 = vadd.f32 %v374_v22, %v231_v20 }
  0xd6   : > { %v305_v23 = vpop.f32.mrf.mxu0  ;;  %v376_v24 = vpop.f32.mrf.mxu1 }
  0xd7   : > { %v306_v26 = vadd.f32 %v305_v23, %v231_v20  ;;  %v377_v28 = vadd.f32 %v376_v24, %v231_v20 }
  0xd9   : > { %v529_v29 = vcombine.low %v304_v25, %v306_v26  ;;  %v530_v30 = vcombine.low %v375_v27, %v377_v28 }
  0xda   : > { %v445_v31 = vpop.f32.mrf.mxu0  ;;  %v516_v32 = vpop.f32.mrf.mxu1 }
  0xdb   : > { %537 = vst [vmem:[%s208_s27] sm:$0xff] %v529_v29  ;;  %538 = vst [vmem:[%s208_s27 + $0x8] sm:$0xff] %v530_v30  ;;  %v446_v35 = vadd.f32 %v445_v31, %v231_v20  ;;  %v517_v36 = vadd.f32 %v516_v32, %v231_v20 }
  0xdc   : > { %v447_v33 = vpop.f32.mrf.mxu0  ;;  %v518_v34 = vpop.f32.mrf.mxu1 }
  0xdd   : > { %v448_v37 = vadd.f32 %v447_v33, %v231_v20  ;;  %v519_v38 = vadd.f32 %v518_v34, %v231_v20 }
  0xdf   : > { %v531_v39 = vcombine.low %v446_v35, %v448_v37  ;;  %v532_v40 = vcombine.low %v517_v36, %v519_v38 }
  0xe1   : > { %539 = vst [vmem:[%s208_s27 + $0x10] sm:$0xff] %v531_v39  ;;  %540 = vst [vmem:[%s208_s27 + $0x18] sm:$0xff] %v532_v40 }
  0xe2 PF: > { %s13_s14 = sadd.s32 1, %s694_s14   ;;  %s787_s12 = smov %s690_s13 }
  0xe3   : > { %p10_p5 = scmp.ge.s32.totalorder %s13_s14, 4   ;;  %s788_s13 = smov %s790_s15 }
  0xe5   :  { %12 = sbr.rel (!%p10_p5) target bundleno = 2 (0x2), region = 62 }

// kernel: esa_forward.4
= control target key start
LH: loop header
LB: loop body
LE: loop exit
PB: predicated region body
PF: predicated region fallthrough
CT: control target
= control target key end

     0   :  { %s1194_s30 = smov 0   ;;  %s1488_s0 = inlined_call_operand.vmem [shape: f32[2,49,324], index: 0, kind: input, shape index: {}]   ;;  %s1489_s1 = inlined_call_operand.vmem [shape: f32[324,36], index: 1, kind: input, shape index: {}]   ;;  %s1490_s2 = inlined_call_operand.vmem [shape: f32[1,36], index: 2, kind: input, shape index: {}]   ;;  %s1491_s3 = inlined_call_operand.vmem [shape: f32[36,36], index: 3, kind: input, shape index: {}]   ;;  %s1492_s4 = inlined_call_operand.vmem [shape: f32[1,36], index: 4, kind: input, shape index: {}]   ;;  %s1493_s5 = inlined_call_operand.vmem [shape: f32[36,36], index: 5, kind: input, shape index: {}]   ;;  %s1494_s6 = inlined_call_operand.vmem [shape: f32[1,36], index: 6, kind: input, shape index: {}]   ;;  %s1495_s7 = inlined_call_operand.vmem [shape: f32[36,36], index: 7, kind: input, shape index: {}]   ;;  %s1496_s8 = inlined_call_operand.vmem [shape: f32[1,36], index: 8, kind: input, shape index: {}]   ;;  %s1497_s9 = inlined_call_operand.vmem [shape: f32[2,1,36], index: 9, kind: output, shape index: {}]  }
   0x1 LB: > { %s936_s10 = sadd.s32 4294967295, %s1140_s30   ;;  %p940_p0 = scmp.ge.s32.totalorder %s1140_s30, 1  ;;  %s1140_s30 = sphi %s1194_s30, %s19_s30  }
   0x2   : > { %p287_p1 = scmp.lt.s32.totalorder %s1140_s30, 3 }
   0x4   : > { %p288_p2 = pnand %p940_p0, %p287_p1 }
   0x5   : > { %p321_p3 = scmp.lt.s32.totalorder (!%p288_p2), %s936_s10, 1 }
   0x6   : > { %291 = sbr.rel (%p288_p2) target bundleno = 878 (0x36e), region = 56 }
   0xb   : > { %v381_v0 = vld [vmem:[%s1489_s1 + $0xf8] sm:$0xff]  ;;  %v380_v2 = vld [vmem:[%s1489_s1 + $0xf0] sm:$0xff]  ;;  %v1142_v4 = vmov 0.0   ;;  %v379_v5 = vld [vmem:[%s1489_s1 + $0xe8] sm:$0xff]  ;;  %vm1143_vm0 = vmmov 0   ;;  %vm413_vm1 = vcmask 1043456  }
   0xc   : > { %v365_v1 = vld [vmem:[%s1489_s1 + $0x78] sm:$0xff]  ;;  %958 = vmatprep.subr.mxu0 %v381_v0  ;;  %v364_v3 = vld [vmem:[%s1489_s1 + $0x70] sm:$0xff]  ;;  %1045 = vmatprep.subr.mxu1 %v1142_v4  ;;  %v363_v6 = vld [vmem:[%s1489_s1 + $0x68] sm:$0xff]  ;;  %s1499_s10 = smov (!%p321_p3, %s936_s10), 1  ;;  %vm391_vm2 = vcmask 556032   ;;  %vm617_vm3 = vcmask 293888  }
   0xd   : > { %959 = vmatpush3.msra.mxu0 %v365_v1  ;;  %1063 = vmatprep.mubr.msk.f32.mxu1 %vm1143_vm0, %v1142_v4  ;;  %v378_v7 = vld [vmem:[%s1489_s1 + $0xe0] sm:$0xff]  ;;  %v377_v9 = vld [vmem:[%s1489_s1 + $0xd8] sm:$0xff]  ;;  %v376_v13 = vld [vmem:[%s1489_s1 + $0xd0] sm:$0xff]  ;;  %s1123_s28 = smul.u32 168, %s1499_s10  ;;  %vm626_vm4 = vcmask 286720   ;;  %s328_s25 = scalar_lea.vmem %s1497_s9, %s1499_s10 }
   0xe   : > { %960 = vmatprep.subr.mxu0 %v380_v2  ;;  %v362_v8 = vld [vmem:[%s1489_s1 + $0x60] sm:$0xff]  ;;  %v361_v11 = vld [vmem:[%s1489_s1 + $0x58] sm:$0xff]  ;;  %v388_v14 = vld [vmem:[%s1489_s1 + $0x130] sm:$0xff] }
   0xf   : > { %961 = vmatpush3.msra.mxu0 %v364_v3  ;;  %v390_v10 = vld [vmem:[%s1489_s1 + $0x140] sm:$0xf]  ;;  %v389_v12 = vld [vmem:[%s1489_s1 + $0x138] sm:$0xff]  ;;  %v360_v15 = vld [vmem:[%s1489_s1 + $0x50] sm:$0xff]  ;;  %s1292_s24 = scalar_lea.vmem %s1488_s0, %s1123_s28 }
  0x10   : > { %962 = vmatprep.subr.mxu0 %v379_v5  ;;  %1046 = vmatpush3.msk.msra.mxu1 %vm413_vm1, %v390_v10  ;;  %v375_v16 = vld [vmem:[%s1489_s1 + $0xc8] sm:$0xff]  ;;  %v374_v19 = vld [vmem:[%s1489_s1 + $0xc0] sm:$0xff]  ;;  %v373_v22 = vld [vmem:[%s1489_s1 + $0xb8] sm:$0xff] }
  0x11   : > { %963 = vmatpush3.msra.mxu0 %v363_v6  ;;  %1047 = vmatprep.subr.mxu1 %v1142_v4  ;;  %v387_v17 = vld [vmem:[%s1489_s1 + $0x128] sm:$0xff]  ;;  %v386_v20 = vld [vmem:[%s1489_s1 + $0x120] sm:$0xff]  ;;  %v385_v23 = vld [vmem:[%s1489_s1 + $0x118] sm:$0xff] }
  0x12   : > { %964 = vmatprep.subr.mxu0 %v378_v7  ;;  %1048 = vmatpush3.msra.mxu1 %v389_v12  ;;  %v359_v18 = vld [vmem:[%s1489_s1 + $0x48] sm:$0xff]  ;;  %v358_v21 = vld [vmem:[%s1489_s1 + $0x40] sm:$0xff]  ;;  %v357_v24 = vld [vmem:[%s1489_s1 + $0x38] sm:$0xff] }
  0x13   : > { %965 = vmatpush3.msra.mxu0 %v362_v8  ;;  %1049 = vmatprep.subr.mxu1 %v1142_v4  ;;  %v372_v25 = vld [vmem:[%s1489_s1 + $0xb0] sm:$0xff]  ;;  %v371_v28 = vld [vmem:[%s1489_s1 + $0xa8] sm:$0xff]  ;;  %v370_v32 = vld [vmem:[%s1489_s1 + $0xa0] sm:$0xff] }
  0x14   : > { %966 = vmatprep.subr.mxu0 %v377_v9  ;;  %1050 = vmatpush3.msra.mxu1 %v388_v14  ;;  %v384_v26 = vld [vmem:[%s1489_s1 + $0x110] sm:$0xff]  ;;  %v330_v29 = vld [vmem:[%s1292_s24 + $0x8] sm:$0xff]  ;;  %v354_v33 = vld [vmem:[%s1489_s1 + $0x20] sm:$0xff] }
  0x15   : > { %967 = vmatpush3.msra.mxu0 %v361_v11  ;;  %1051 = vmatprep.subr.mxu1 %v1142_v4  ;;  %v356_v27 = vld [vmem:[%s1489_s1 + $0x30] sm:$0xff]  ;;  %v355_v30 = vld [vmem:[%s1489_s1 + $0x28] sm:$0xff]  ;;  %v382_v34 = vld [vmem:[%s1489_s1 + $0x100] sm:$0xff] }
  0x16   : > { %968 = vmatprep.subr.mxu0 %v376_v13  ;;  %1052 = vmatpush3.msra.mxu1 %v387_v17  ;;  %v383_v31 = vld [vmem:[%s1489_s1 + $0x108] sm:$0xff]  ;;  %v369_v35 = vld [vmem:[%s1489_s1 + $0x98] sm:$0xff]  ;;  %v331_v36 = vld [vmem:[%s1292_s24 + $0x10] sm:$0xff] }
  0x17   : > { %969 = vmatpush3.msra.mxu0 %v360_v15  ;;  %1053 = vmatprep.subr.mxu1 %v1142_v4  ;;  %v353_v37 = vld [vmem:[%s1489_s1 + $0x18] sm:$0xff]  ;;  %v368_v38 = vld [vmem:[%s1489_s1 + $0x90] sm:$0xff]  ;;  %v367_v40 = vld [vmem:[%s1489_s1 + $0x88] sm:$0xff] }
  0x18   : > { %970 = vmatprep.subr.mxu0 %v375_v16  ;;  %1054 = vmatpush3.msra.mxu1 %v386_v20  ;;  %v352_v39 = vld [vmem:[%s1489_s1 + $0x10] sm:$0xff]  ;;  %v334_v41 = vld [vmem:[%s1292_s24 + $0x28] sm:$0xff]  ;;  %v366_v43 = vld [vmem:[%s1489_s1 + $0x80] sm:$0xff] }
  0x19   : > { %971 = vmatpush3.msra.mxu0 %v359_v18  ;;  %1055 = vmatprep.subr.mxu1 %v1142_v4  ;;  %v351_v42 = vld [vmem:[%s1489_s1 + $0x8] sm:$0xff]  ;;  %v350_v44 = vld [vmem:[%s1489_s1] sm:$0xff]  ;;  %v332_v48 = vld [vmem:[%s1292_s24 + $0x18] sm:$0xff] }
  0x1a   : > { %972 = vmatprep.subr.mxu0 %v374_v19  ;;  %1056 = vmatpush3.msra.mxu1 %v385_v23  ;;  %v329_v45 = vld [vmem:[%s1292_s24] sm:$0xff]  ;;  %v340_v49 = vld [vmem:[%s1292_s24 + $0x58] sm:$0xff]  ;;  %v335_v51 = vld [vmem:[%s1292_s24 + $0x30] sm:$0xff] }
  0x1b   : > { %973 = vmatpush3.msra.mxu0 %v358_v21  ;;  %1057 = vmatprep.subr.mxu1 %v1142_v4  ;;  %v337_v46 = vld [vmem:[%s1292_s24 + $0x40] sm:$0xff]  ;;  %v336_v50 = vld [vmem:[%s1292_s24 + $0x38] sm:$0xff]  ;;  %v343_v52 = vld [vmem:[%s1292_s24 + $0x70] sm:$0xff] }
  0x1c   : > { %974 = vmatprep.subr.mxu0 %v373_v22  ;;  %1058 = vmatpush3.msra.mxu1 %v384_v26  ;;  %v333_v47 = vld [vmem:[%s1292_s24 + $0x20] sm:$0xff]  ;;  %v339_v53 = vld [vmem:[%s1292_s24 + $0x50] sm:$0xff]  ;;  %v338_v54 = vld [vmem:[%s1292_s24 + $0x48] sm:$0xff] }
  0x1d   : > { %975 = vmatpush3.msra.mxu0 %v357_v24  ;;  %1059 = vmatprep.subr.mxu1 %v1142_v4  ;;  %v346_v55 = vld [vmem:[%s1292_s24 + $0x88] sm:$0xff]  ;;  %v341_v57 = vld [vmem:[%s1292_s24 + $0x60] sm:$0xff]  ;;  %v344_v60 = vld [vmem:[%s1292_s24 + $0x78] sm:$0xff] }
  0x1e   : > { %976 = vmatprep.subr.mxu0 %v372_v25  ;;  %481 = vmatprep.mubr.f32.mxu0 %v330_v29  ;;  %v342_v56 = vld [vmem:[%s1292_s24 + $0x68] sm:$0xff]  ;;  %v349_v58 = vld [vmem:[%s1292_s24 + $0xa0] sm:$0x1]  ;;  %v348_v61 = vld [vmem:[%s1292_s24 + $0x98] sm:$0x1] }
  0x1f   : > { %977 = vmatpush3.msra.mxu0 %v356_v27  ;;  %1060 = vmatpush3.msra.mxu1 %v383_v31  ;;  %v345_v59 = vld [vmem:[%s1292_s24 + $0x80] sm:$0xff]  ;;  %v347_v62 = vld [vmem:[%s1292_s24 + $0x90] sm:$0x1]  ;;  %v643_v0 = vld [vmem:[%s1491_s3 + $0x18] sm:$0xff] }
  0x20   : > { %978 = vmatprep.subr.mxu0 %v371_v28  ;;  %1061 = vmatprep.subr.mxu1 %v1142_v4  ;;  %v644_v63 = vld [vmem:[%s1491_s3 + $0x20] sm:$0xf]  ;;  %v642_v1 = vld [vmem:[%s1491_s3 + $0x10] sm:$0xff]  ;;  %v641_v2 = vld [vmem:[%s1491_s3 + $0x8] sm:$0xff] }
  0x21   : > { %979 = vmatpush3.msra.mxu0 %v355_v30  ;;  %1062 = vmatpush3.msra.mxu1 %v382_v34  ;;  %v640_v3 = vld [vmem:[%s1491_s3] sm:$0xff] }
  0x22   : > { %980 = vmatprep.subr.mxu0 %v370_v32  ;;  %1064 = vmatmul.mubr.msk.f32.vlgmr.msra.gmra.mxu1 %vm391_vm2, %v331_v36 }
  0x23   : > { %981 = vmatpush3.msra.mxu0 %v354_v33  ;;  %1066 = vmatprep.mubr.msk.f32.mxu1 %vm1143_vm0, %v1142_v4 }
  0x24   : > { %982 = vmatprep.subr.mxu0 %v369_v35  ;;  %1084 = vmatprep.subr.mxu1 %v1142_v4 }
  0x25   : > { %983 = vmatpush3.msra.mxu0 %v353_v37  ;;  %1085 = vmatpush3.msk.msra.mxu1 %vm413_vm1, %v644_v63 }
  0x26   : > { %984 = vmatprep.subr.mxu0 %v368_v38  ;;  %1067 = vmatmul.mubr.msk.f32.gmra.mxu1 %vm391_vm2, %v334_v41 }
  0x27   : > { %985 = vmatpush3.msra.mxu0 %v352_v39  ;;  %1069 = vmatprep.mubr.msk.f32.mxu1 %vm1143_vm0, %v1142_v4 }
  0x28   : > { %986 = vmatprep.subr.mxu0 %v367_v40  ;;  %1086 = vmatprep.subr.mxu1 %v1142_v4 }
  0x29   : > { %987 = vmatpush3.msra.mxu0 %v351_v42  ;;  %1087 = vmatpush3.msra.mxu1 %v643_v0 }
  0x2a   : > { %988 = vmatprep.subr.mxu0 %v366_v43  ;;  %1070 = vmatmul.mubr.msk.f32.gmra.mxu1 %vm391_vm2, %v337_v46 }
  0x2b   : > { %989 = vmatpush3.msra.mxu0 %v350_v44  ;;  %1072 = vmatprep.mubr.msk.f32.mxu1 %vm1143_vm0, %v1142_v4 }
  0x2c   : > { %482 = vmatmul.mubr.f32.vlgmr.msra.gmra.mxu0 %v329_v45  ;;  %1110 = vmatprep.subr.mxu0 %v1142_v4 }
  0x2d   : > { %486 = vmatprep.mubr.f32.mxu0 %v333_v47  ;;  %1088 = vmatprep.subr.mxu1 %v1142_v4 }
  0x2e   : > { %1073 = vmatmul.mubr.msk.f32.gmra.mxu1 %vm391_vm2, %v340_v49 }
  0x2f   : > { %1075 = vmatprep.mubr.msk.f32.mxu1 %vm1143_vm0, %v1142_v4  ;;  %1089 = vmatpush3.msra.mxu1 %v642_v1  ;;  %v638_v1 = vld [vmem:[%s1490_s2] sm:$0x1] }
  0x30   : > { %487 = vmatmul.mubr.f32.gmra.mxu0 %v332_v48  ;;  %1090 = vmatprep.subr.mxu1 %v1142_v4 }
  0x31   : > { %491 = vmatprep.mubr.f32.mxu0 %v336_v50  ;;  %1091 = vmatpush3.msra.mxu1 %v641_v2 }
  0x32   : > { %1076 = vmatmul.mubr.msk.f32.gmra.mxu1 %vm391_vm2, %v343_v52  ;;  %1092 = vmatprep.subr.mxu1 %v1142_v4 }
  0x33   : > { %1078 = vmatprep.mubr.msk.f32.mxu1 %vm1143_vm0, %v1142_v4  ;;  %1093 = vmatpush3.msra.mxu1 %v640_v3 }
  0x34   : > { %492 = vmatmul.mubr.f32.gmra.mxu0 %v335_v51  ;;  %1097 = vmatprep.subr.mxu1 %v1142_v4 }
  0x35   : > { %496 = vmatprep.mubr.f32.mxu0 %v339_v53 }
  0x36   : > { %1079 = vmatmul.mubr.msk.f32.gmra.mxu1 %vm391_vm2, %v346_v55 }
  0x37   : > { %1081 = vmatprep.mubr.msk.f32.mxu1 %vm1143_vm0, %v1142_v4 }
  0x38   : > { %497 = vmatmul.mubr.f32.gmra.mxu0 %v338_v54 }
  0x39   : > { %501 = vmatprep.mubr.f32.mxu0 %v342_v56 }
  0x3a   : > { %1082 = vmatmul.mubr.msk.f32.gmra.mxu1 %vm391_vm2, %v349_v58 }
  0x3b   : > { %1094 = vmatprep.mubr.msk.f32.mxu1 %vm1143_vm0, %v1142_v4 }
  0x3c   : > { %502 = vmatmul.mubr.f32.gmra.mxu0 %v341_v57 }
  0x3d   : > { %506 = vmatprep.mubr.f32.mxu0 %v345_v59 }
  0x40   : > { %507 = vmatmul.mubr.f32.gmra.mxu0 %v344_v60 }
  0x41   : > { %511 = vmatprep.mubr.f32.mxu0 %v348_v61 }
  0x44   : > { %512 = vmatmul.mubr.f32.gmra.mxu0 %v347_v62 }
  0x45   : > { %1120 = vmatprep.mubr.msk.f32.mxu0 %vm1143_vm0, %v1142_v4 }
  0xe2   : > { %v583_v5 = vpop.f32.mrf.mxu1 }
  0xe4   : > { %v1065_v6 = vpop.f32.mrf.mxu1 }
  0xe5   : > { %v726_v6 = vld [vmem:[%s1493_s5 + $0x18] sm:$0xff] }
  0xe6   : > { %v588_v7 = vpop.f32.mrf.mxu1 }
  0xe8   : > { %v1068_v8 = vpop.f32.mrf.mxu1 }
  0xe9   : > { %v724_v8 = vld [vmem:[%s1493_s5 + $0x8] sm:$0xff] }
  0xea   : > { %v593_v10 = vpop.f32.mrf.mxu1 }
  0xec   : > { %v990_v9 = vpop.f32.mrf.mxu0  ;;  %v1071_v12 = vpop.f32.mrf.mxu1 }
  0xed   : > { %v808_v12 = vld [vmem:[%s1495_s7 + $0x10] sm:$0xff] }
  0xee   : > { %v991_v11 = vpop.f32.mrf.mxu0  ;;  %v598_v14 = vpop.f32.mrf.mxu1 }
  0xef   : > { %v992_v33 = vadd.f32 %v991_v11, %v990_v9  ;;  %v723_v9 = vld [vmem:[%s1493_s5] sm:$0xff]  ;;  %v809_v11 = vld [vmem:[%s1495_s7 + $0x18] sm:$0xff] }
  0xf0   : > { %v993_v13 = vpop.f32.mrf.mxu0  ;;  %v1074_v16 = vpop.f32.mrf.mxu1 }
  0xf1   : > { %v584_v42 = vadd.f32 %v992_v33, %v583_v5  ;;  %v727_v5 = vld [vmem:[%s1493_s5 + $0x20] sm:$0xf] }
  0xf2   : > { %v994_v15 = vpop.f32.mrf.mxu0  ;;  %v603_v18 = vpop.f32.mrf.mxu1 }
  0xf3   : > { %v995_v30 = vadd.f32 %v994_v15, %v993_v13  ;;  %v618_v51 = vsel %vm617_vm3, %v584_v42, -inf  ;;  %v807_v13 = vld [vmem:[%s1495_s7 + $0x8] sm:$0xff] }
  0xf4   : > { %v996_v17 = vpop.f32.mrf.mxu0  ;;  %v1077_v20 = vpop.f32.mrf.mxu1 }
  0xf5   : > { %v589_v37 = vadd.f32 %v995_v30, %v588_v7  ;;  %v725_v7 = vld [vmem:[%s1493_s5 + $0x10] sm:$0xff] }
  0xf6   : > { %v997_v19 = vpop.f32.mrf.mxu0  ;;  %v608_v22 = vpop.f32.mrf.mxu1 }
  0xf7   : > { %v998_v34 = vadd.f32 %v997_v19, %v996_v17  ;;  %v619_v46 = vsel %vm617_vm3, %v589_v37, -inf  ;;  %v806_v19 = vld [vmem:[%s1495_s7] sm:$0xff] }
  0xf8   : > { %v999_v21 = vpop.f32.mrf.mxu0  ;;  %v1080_v24 = vpop.f32.mrf.mxu1 }
  0xf9   : > { %v594_v43 = vadd.f32 %v998_v34, %v593_v10  ;;  %v810_v10 = vld [vmem:[%s1495_s7 + $0x20] sm:$0xf] }
  0xfa   : > { %v1000_v23 = vpop.f32.mrf.mxu0  ;;  %v613_v26 = vpop.f32.mrf.mxu1  ;;  %1111 = vmatpush3.msk.msra.mxu0 %vm413_vm1, %v810_v10  ;;  %v811_v24 = vld [vmem:[%s1496_s8] sm:$0x1] }
  0xfb   : > { %v1001_v38 = vadd.f32 %v1000_v23, %v999_v21  ;;  %v620_v52 = vsel %vm617_vm3, %v594_v43, -inf  ;;  %1112 = vmatprep.subr.mxu0 %v1142_v4 }
  0xfc   : > { %v1002_v25 = vpop.f32.mrf.mxu0  ;;  %v1083_v28 = vpop.f32.mrf.mxu1  ;;  %1113 = vmatpush3.msra.mxu0 %v809_v11 }
  0xfd   : > { %v599_v47 = vadd.f32 %v1001_v38, %v598_v14  ;;  %1114 = vmatprep.subr.mxu0 %v1142_v4  ;;  %v645_v14 = vld [vmem:[%s1492_s4] sm:$0x1] }
  0xfe   : > { %v1003_v27 = vpop.f32.mrf.mxu0  ;;  %1115 = vmatpush3.msra.mxu0 %v808_v12 }
  0xff   : > { %v1004_v31 = vadd.f32 %v1003_v27, %v1002_v25  ;;  %v621_v56 = vsel %vm617_vm3, %v599_v47, -inf  ;;  %1116 = vmatprep.subr.mxu0 %v1142_v4 }
 0x100   : > { %v1005_v29 = vpop.f32.mrf.mxu0  ;;  %1117 = vmatpush3.msra.mxu0 %v807_v13 }
 0x101   : > { %v604_v39 = vadd.f32 %v1004_v31, %v603_v18  ;;  %1118 = vmatprep.subr.mxu0 %v1142_v4 }
 0x102   : > { %v1006_v32 = vpop.f32.mrf.mxu0  ;;  %1119 = vmatpush3.msra.mxu0 %v806_v19 }
 0x103   : > { %v1007_v35 = vadd.f32 %v1006_v32, %v1005_v29  ;;  %v622_v48 = vsel %vm617_vm3, %v604_v39, -inf }
 0x104   : > { %v1008_v36 = vpop.f32.mrf.mxu0  ;;  %v623_v54 = vmax.f32 %v618_v51, %v622_v48 }
 0x105   : > { %v609_v40 = vadd.f32 %v1007_v35, %v608_v22 }
 0x106   : > { %v1009_v41 = vpop.f32.mrf.mxu0 }
 0x107   : > { %v624_v44 = vsel %vm617_vm3, %v609_v40, -inf  ;;  %v1010_v45 = vadd.f32 %v1009_v41, %v1008_v36 }
 0x108   : > { %v625_v50 = vmax.f32 %v619_v46, %v624_v44 }
 0x109   : > { %v614_v49 = vadd.f32 %v1010_v45, %v613_v26 }
 0x10a   : > { %v629_v57 = vmax.f32 %v623_v54, %v625_v50 }
 0x10b   : > { %v627_v53 = vsel %vm626_vm4, %v614_v49, -inf }
 0x10c   : > { %v628_v55 = vmax.f32 %v620_v52, %v627_v53 }
 0x10e   : > { %v630_v58 = vmax.f32 %v628_v55, %v621_v56 }
 0x110   : > { %v631_v59 = vmax.f32 %v629_v57, %v630_v58 }
 0x112   : > { %v632_v60 = vrot.slane %v631_v59, 4 }
 0x114   : > { %v633_v61 = vmax.f32 %v631_v59, %v632_v60 }
 0x116   : > { %v634_v62 = vrot.slane %v633_v61, 2 }
 0x118   : > { %v635_v63 = vmax.f32 %v633_v61, %v634_v62 }
 0x11a   : > { %v636_v0 = vrot.slane %v635_v63, 1 }
 0x11c   : > { %v637_v2 = vmax.f32 %v635_v63, %v636_v0 }
 0x11e   : > { %v639_v3 = vadd.f32 %v638_v1, %v637_v2 }
 0x120   : > { %1095 = vmatmul.mubr.msk.f32.vlgmr.msra.gmra.mxu1 %vm617_vm3, %v639_v3 }
 0x121   : > { %1098 = vmatpush3.msk.msra.mxu1 %vm413_vm1, %v727_v5  ;;  %1107 = vmatprep.mubr.msk.f32.mxu1 %vm1143_vm0, %v1142_v4 }
 0x122   : > { %1099 = vmatprep.subr.mxu1 %v1142_v4 }
 0x123   : > { %1100 = vmatpush3.msra.mxu1 %v726_v6 }
 0x124   : > { %1101 = vmatprep.subr.mxu1 %v1142_v4 }
 0x125   : > { %1102 = vmatpush3.msra.mxu1 %v725_v7 }
 0x126   : > { %1103 = vmatprep.subr.mxu1 %v1142_v4 }
 0x127   : > { %1104 = vmatpush3.msra.mxu1 %v724_v8 }
 0x128   : > { %1105 = vmatprep.subr.mxu1 %v1142_v4  ;;  %v728_v4 = vld [vmem:[%s1494_s6] sm:$0x1] }
 0x129   : > { %1106 = vmatpush3.msra.mxu1 %v723_v9 }
 0x1e0   : > { %v718_v15 = vpop.f32.mrf.mxu1 }
 0x1e1   : > { %v719_v16 = vadd.f32 %v718_v15, %v645_v14 }
 0x1e2   : > { %v1096_v17 = vpop.f32.mrf.mxu1 }
 0x1e3   : > { %v722_v18 = vmax.f32 %v719_v16, 0.0 }
 0x1e5   : > { %1108 = vmatmul.mubr.msk.f32.vlgmr.msra.gmra.mxu1 %vm617_vm3, %v722_v18 }
 0x2a5   : > { %v801_v20 = vpop.f32.mrf.mxu1 }
 0x2a6   : > { %v802_v21 = vadd.f32 %v801_v20, %v728_v4 }
 0x2a7   : > { %v1109_v22 = vpop.f32.mrf.mxu1 }
 0x2a8   : > { %v805_v23 = vmax.f32 %v802_v21, 0.0 }
 0x2aa   : > { %1121 = vmatmul.mubr.msk.f32.vlgmr.msra.gmra.mxu0 %vm617_vm3, %v805_v23 }
 0x36a   : > { %v884_v25 = vpop.f32.mrf.mxu0 }
 0x36b   : > { %v885_v26 = vadd.f32 %v884_v25, %v811_v24 }
 0x36c   : > { %v1122_v27 = vpop.f32.mrf.mxu0 }
 0x36d   : > { %888 = vst.msk [vmem:[%s328_s25] sm:$0x1] %vm626_vm4, %v885_v26 }
 0x36e PF: > { %s19_s30 = sadd.s32 1, %s1140_s30  }
 0x36f   : > { %p16_p4 = scmp.ge.s32.totalorder %s19_s30, 4  }
 0x371   :  { %18 = sbr.rel (!%p16_p4) target bundleno = 1 (0x1), region = 86 }

// kernel: esa_forward.5
= control target key start
LH: loop header
LB: loop body
LE: loop exit
PB: predicated region body
PF: predicated region fallthrough
CT: control target
= control target key end

     0   :  { %s1471_s18 = smov 0   ;;  %s1473_s19 = smov 0   ;;  %s1721_s0 = inlined_call_operand.vmem [shape: f32[2,16,1024], index: 0, kind: input, shape index: {}]   ;;  %s1722_s1 = inlined_call_operand.vmem [shape: f32[2,16,9], index: 1, kind: input, shape index: {}]   ;;  %s1723_s2 = inlined_call_operand.vmem [shape: f32[9,1024], index: 2, kind: input, shape index: {}]   ;;  %s1724_s3 = inlined_call_operand.vmem [shape: f32[16,16], index: 3, kind: input, shape index: {}]   ;;  %s1725_s4 = inlined_call_operand.vmem [shape: f32[16,1], index: 4, kind: input, shape index: {}]   ;;  %s1726_s5 = inlined_call_operand.vmem [shape: f32[2,16,1024], index: 5, kind: output, shape index: {}]  }
   0x1   :  { %s1475_s20 = smov 0  }
   0x2 LB: > { %s24_s21 = sadd.s32 1, %s1433_s19  ;;  %p1272_p0 = scmp.ge.s32.totalorder %s1437_s20, 1  ;;  %s1437_s20 = sphi %s1475_s20, %s15_s20   ;;  %s1433_s19 = sphi %s1473_s19, %s1728_s19   ;;  %s1429_s18 = sphi %s1471_s18, %s1727_s18  }
   0x3   : > { %p25_p1 = scmp.ge.s32.totalorder %s24_s21, 2  ;;  %p229_p2 = scmp.lt.s32.totalorder %s1437_s20, 3 }
   0x5   : > { %s1730_s21 = smov (%p25_p1, %s24_s21), 0  ;;  %p230_p3 = pnand %p1272_p0, %p229_p2 }
   0x6   : > { %p276_p4 = scmp.lt.s32.totalorder (!%p230_p3), %s1429_s18, 1 }
   0x7   : > { %233 = sbr.rel (%p230_p3) target bundleno = 288 (0x120), region = 40 }
   0xc   : > { %v1439_v0 = vmov 0.0   ;;  %s1732_s18 = smov (!%p276_p4, %s1429_s18), 1  ;;  %v1440_v1 = vmov 0   ;;  %v340_v10 = vld [vmem:[%s1724_s3] sm:$0xff]  ;;  %vm342_vm0 = vcmask 130048   ;;  %v341_v15 = vld [vmem:[%s1724_s3 + $0x8] sm:$0xff] }
   0xd   : > { %413 = vmatprep.mubr.f32.mxu0 %v1439_v0  ;;  %490 = vmatprep.mubr.f32.mxu1 %v1439_v0  ;;  %s1321_s22 = sshll.u32 %s1732_s18, 7  ;;  %v333_v20 = vld [vmem:[%s1723_s2 + $0x48] sm:$0x1]  ;;  %vm664_vm1 = vcmask 1040384   ;;  %v335_v21 = vld [vmem:[%s1723_s2 + $0x58] sm:$0x1] }
   0xe   : > { %1350 = vset.pattern.permute.xlu0 %v1440_v1  ;;  %s1499_s25 = scalar_lea.vmem %s1721_s0, %s1321_s22  ;;  %v332_v22 = vld [vmem:[%s1723_s2 + $0x40] sm:$0x1]  ;;  %v334_v23 = vld [vmem:[%s1723_s2 + $0x50] sm:$0x1]  ;;  %s1322_s13 = sshll.u32 %s1732_s18, 4  ;;  %v325_v24 = vld [vmem:[%s1723_s2 + $0x8] sm:$0xff] }
   0xf   : > { %v1502_v2 = vld [vmem:[%s1499_s25 + $0x48] sm:$0xff]  ;;  %v1505_v3 = vld [vmem:[%s1499_s25 + $0x58] sm:$0xff]  ;;  %v1508_v4 = vld [vmem:[%s1499_s25 + $0x40] sm:$0xff]  ;;  %vm657_vm2 = vcmask 72704   ;;  %s1678_s7 = scalar_lea.vmem %s1726_s5, %s1321_s22 }
  0x10   : > { %377 = vmatprep.subr.mxu0 %v1502_v2  ;;  %454 = vmatprep.subr.mxu1 %v1505_v3  ;;  %v1513_v5 = vld [vmem:[%s1499_s25 + $0x50] sm:$0xff]  ;;  %v1516_v6 = vld [vmem:[%s1499_s25 + $0x8] sm:$0xff]  ;;  %v1519_v7 = vld [vmem:[%s1499_s25 + $0x18] sm:$0xff] }
  0x11   : > { %378 = vmatpush1.msra.mxu0 %v1508_v4  ;;  %455 = vmatpush1.msra.mxu1 %v1513_v5  ;;  %v1524_v8 = vld [vmem:[%s1499_s25] sm:$0xff]  ;;  %v1527_v9 = vld [vmem:[%s1499_s25 + $0x10] sm:$0xff]  ;;  %v1535_v11 = vld [vmem:[%s1499_s25 + $0x68] sm:$0xff] }
  0x12   : > { %379 = vmatprep.subr.mxu0 %v1516_v6  ;;  %456 = vmatprep.subr.mxu1 %v1519_v7  ;;  %v1538_v12 = vld [vmem:[%s1499_s25 + $0x78] sm:$0xff]  ;;  %v1543_v13 = vld [vmem:[%s1499_s25 + $0x60] sm:$0xff]  ;;  %v1546_v14 = vld [vmem:[%s1499_s25 + $0x70] sm:$0xff] }
  0x13   : > { %380 = vmatpush1.msra.mxu0 %v1524_v8  ;;  %457 = vmatpush1.msra.mxu1 %v1527_v9  ;;  %v1558_v16 = vld [vmem:[%s1499_s25 + $0x28] sm:$0xff]  ;;  %v1561_v17 = vld [vmem:[%s1499_s25 + $0x38] sm:$0xff]  ;;  %v1566_v18 = vld [vmem:[%s1499_s25 + $0x20] sm:$0xff] }
  0x14   : > { %1279 = vmatmul.mubr.msk.f32.vlgmr.msra.gmra.mxu0 %vm342_vm0, %v340_v10  ;;  %1281 = vmatmul.mubr.msk.f32.vlgmr.msra.gmra.mxu1 %vm342_vm0, %v340_v10  ;;  %v1569_v19 = vld [vmem:[%s1499_s25 + $0x30] sm:$0xff]  ;;  %v327_v25 = vld [vmem:[%s1723_s2 + $0x18] sm:$0xff]  ;;  %s289_s25 = scalar_lea.vmem %s1722_s1, %s1322_s13  ;;  %v324_v26 = vld [vmem:[%s1723_s2] sm:$0xff] }
  0x15   : > { %531 = vmatprep.subr.mxu0 %v1535_v11  ;;  %608 = vmatprep.subr.mxu1 %v1538_v12  ;;  %v326_v27 = vld [vmem:[%s1723_s2 + $0x10] sm:$0xff]  ;;  %v322_v28 = vld [vmem:[%s289_s25] sm:$0xff]  ;;  %v337_v29 = vld [vmem:[%s1723_s2 + $0x68] sm:$0x1] }
  0x16   : > { %532 = vmatpush1.msra.mxu0 %v1543_v13  ;;  %609 = vmatpush1.msra.mxu1 %v1546_v14  ;;  %v339_v30 = vld [vmem:[%s1723_s2 + $0x78] sm:$0x1]  ;;  %v336_v31 = vld [vmem:[%s1723_s2 + $0x60] sm:$0x1]  ;;  %v338_v32 = vld [vmem:[%s1723_s2 + $0x70] sm:$0x1] }
  0x17   : > { %419 = vmatprep.mubr.f32.mxu0 %v1439_v0  ;;  %496 = vmatprep.mubr.f32.mxu1 %v1439_v0  ;;  %v323_v33 = vld [vmem:[%s289_s25 + $0x8] sm:$0xff]  ;;  %v331_v35 = vld [vmem:[%s1723_s2 + $0x38] sm:$0xff]  ;;  %v328_v36 = vld [vmem:[%s1723_s2 + $0x20] sm:$0xff] }
  0x18   : > { %1280 = vmatmul.mubr.msk.f32.gmra.mxu0 %vm342_vm0, %v341_v15  ;;  %1282 = vmatmul.mubr.msk.f32.gmra.mxu1 %vm342_vm0, %v341_v15  ;;  %v329_v34 = vld [vmem:[%s1723_s2 + $0x28] sm:$0xff]  ;;  %v330_v37 = vld [vmem:[%s1723_s2 + $0x30] sm:$0xff]  ;;  %v997_v38 = vld [vmem:[%s1725_s4] sm:$0xff] }
  0x19   : > { %533 = vmatprep.subr.mxu0 %v1558_v16  ;;  %610 = vmatprep.subr.mxu1 %v1561_v17  ;;  %v998_v39 = vld [vmem:[%s1725_s4 + $0x8] sm:$0xff] }
  0x1a   : > { %534 = vmatpush1.msra.mxu0 %v1566_v18  ;;  %611 = vmatpush1.msra.mxu1 %v1569_v19 }
  0x1b   : > { %567 = vmatprep.mubr.f32.mxu0 %v1439_v0  ;;  %644 = vmatprep.mubr.f32.mxu1 %v1439_v0 }
  0x1c   : > { %1283 = vmatmul.mubr.msk.f32.vlgmr.msra.gmra.mxu0 %vm342_vm0, %v340_v10  ;;  %1285 = vmatmul.mubr.msk.f32.vlgmr.msra.gmra.mxu1 %vm342_vm0, %v340_v10 }
  0x1d   : > { %1287 = vmatprep.subr.msk.mxu0 %vm664_vm1, %v333_v20  ;;  %1291 = vmatprep.subr.msk.mxu1 %vm664_vm1, %v335_v21 }
  0x1e   : > { %1288 = vmatpush1.msk.msra.mxu0 %vm664_vm1, %v332_v22  ;;  %1292 = vmatpush1.msk.msra.mxu1 %vm664_vm1, %v334_v23 }
  0x1f   : > { %573 = vmatprep.mubr.f32.mxu0 %v1439_v0  ;;  %650 = vmatprep.mubr.f32.mxu1 %v1439_v0 }
  0x20   : > { %1284 = vmatmul.mubr.msk.f32.gmra.mxu0 %vm342_vm0, %v341_v15  ;;  %1286 = vmatmul.mubr.msk.f32.gmra.mxu1 %vm342_vm0, %v341_v15 }
  0x21   : > { %719 = vmatprep.subr.mxu0 %v325_v24  ;;  %796 = vmatprep.subr.mxu1 %v327_v25 }
  0x22   : > { %720 = vmatpush1.msra.mxu0 %v324_v26  ;;  %797 = vmatpush1.msra.mxu1 %v326_v27 }
  0x23   : > { %753 = vmatprep.mubr.f32.mxu0 %v1439_v0  ;;  %830 = vmatprep.mubr.f32.mxu1 %v1439_v0 }
  0x24   : > { %1289 = vmatmul.mubr.msk.f32.vlgmr.msra.gmra.mxu0 %vm657_vm2, %v322_v28  ;;  %1293 = vmatmul.mubr.msk.f32.vlgmr.msra.gmra.mxu1 %vm657_vm2, %v322_v28 }
  0x25   : > { %1295 = vmatprep.subr.msk.mxu0 %vm664_vm1, %v337_v29  ;;  %1299 = vmatprep.subr.msk.mxu1 %vm664_vm1, %v339_v30 }
  0x26   : > { %1296 = vmatpush1.msk.msra.mxu0 %vm664_vm1, %v336_v31  ;;  %1300 = vmatpush1.msk.msra.mxu1 %vm664_vm1, %v338_v32 }
  0x27   : > { %759 = vmatprep.mubr.f32.mxu0 %v1439_v0  ;;  %836 = vmatprep.mubr.f32.mxu1 %v1439_v0 }
  0x28   : > { %1290 = vmatmul.mubr.msk.f32.gmra.mxu0 %vm657_vm2, %v323_v33  ;;  %1294 = vmatmul.mubr.msk.f32.gmra.mxu1 %vm657_vm2, %v323_v33 }
  0x29   : > { %873 = vmatprep.subr.mxu0 %v329_v34  ;;  %950 = vmatprep.subr.mxu1 %v331_v35 }
  0x2a   : > { %874 = vmatpush1.msra.mxu0 %v328_v36  ;;  %951 = vmatpush1.msra.mxu1 %v330_v37 }
  0x2b   : > { %907 = vmatprep.mubr.f32.mxu0 %v1439_v0  ;;  %984 = vmatprep.mubr.f32.mxu1 %v1439_v0 }
  0x2c   : > { %1297 = vmatmul.mubr.msk.f32.vlgmr.msra.gmra.mxu0 %vm657_vm2, %v322_v28  ;;  %1301 = vmatmul.mubr.msk.f32.vlgmr.msra.gmra.mxu1 %vm657_vm2, %v322_v28 }
  0x2d   : > { %913 = vmatprep.mubr.f32.mxu0 %v1439_v0  ;;  %990 = vmatprep.mubr.f32.mxu1 %v1439_v0 }
  0x2e   : > { %1001 = vperm.xlu0 %1350, %v997_v38  }
  0x30   : > { %1298 = vmatmul.mubr.msk.f32.gmra.mxu0 %vm657_vm2, %v323_v33  ;;  %1302 = vmatmul.mubr.msk.f32.gmra.mxu1 %vm657_vm2, %v323_v33 }
  0x32   : > { %1006 = vperm.xlu0 %1350, %v998_v39  }
  0xa9   : > { %v1002_v56 = vpop.permute.xlu0 %1001 }
  0xad   : > { %v1007_v25 = vpop.permute.xlu0 %1006 }
  0xd4   : > { %v415_v40 = vpop.f32.mrf.mxu0  ;;  %v492_v41 = vpop.f32.mrf.mxu1 }
  0xd6   : > { %v417_v42 = vpop.f32.mrf.mxu0  ;;  %v494_v43 = vpop.f32.mrf.mxu1 }
  0xd8   : > { %v421_v44 = vpop.f32.mrf.mxu0  ;;  %v498_v45 = vpop.f32.mrf.mxu1 }
  0xda   : > { %v423_v46 = vpop.f32.mrf.mxu0  ;;  %v500_v47 = vpop.f32.mrf.mxu1 }
  0xdc   : > { %v569_v48 = vpop.f32.mrf.mxu0  ;;  %v646_v49 = vpop.f32.mrf.mxu1 }
  0xde   : > { %v571_v50 = vpop.f32.mrf.mxu0  ;;  %v648_v51 = vpop.f32.mrf.mxu1 }
  0xe0   : > { %v575_v52 = vpop.f32.mrf.mxu0  ;;  %v652_v53 = vpop.f32.mrf.mxu1 }
  0xe2   : > { %v1667_v54 = vpop.f32.mrf.mxu0  ;;  %v1669_v55 = vpop.f32.mrf.mxu1 }
  0xe4   : > { %v755_v57 = vpop.f32.mrf.mxu0  ;;  %v832_v58 = vpop.f32.mrf.mxu1 }
  0xe5   : > { %v756_v59 = vadd.f32 %v755_v57, %v415_v40  ;;  %v833_v60 = vadd.f32 %v832_v58, %v492_v41 }
  0xe6   : > { %v757_v61 = vpop.f32.mrf.mxu0  ;;  %v834_v62 = vpop.f32.mrf.mxu1 }
  0xe7   : > { %v1009_v63 = vadd.f32 %v1002_v56, %v756_v59  ;;  %v1011_v0 = vadd.f32 %v1002_v56, %v833_v60  ;;  %v758_v1 = vadd.f32 %v757_v61, %v417_v42  ;;  %v835_v10 = vadd.f32 %v834_v62, %v494_v43 }
  0xe8   : > { %v761_v15 = vpop.f32.mrf.mxu0  ;;  %v838_v20 = vpop.f32.mrf.mxu1 }
  0xe9   : > { %v1303_v21 = vmul.f32 -1.442695, %v1009_v63  ;;  %v1305_v22 = vmul.f32 -1.442695, %v1011_v0  ;;  %v1010_v23 = vadd.f32 %v1002_v56, %v758_v1  ;;  %v1012_v24 = vadd.f32 %v1002_v56, %v835_v10 }
  0xea   : > { %v762_v26 = vadd.f32 %v761_v15, %v421_v44  ;;  %v839_v27 = vadd.f32 %v838_v20, %v498_v45  ;;  %v763_v28 = vpop.f32.mrf.mxu0  ;;  %v840_v29 = vpop.f32.mrf.mxu1 }
  0xeb   : > { %1351 = vpow2.f32 %v1303_v21  ;;  %v1304_v30 = vmul.f32 -1.442695, %v1010_v23  ;;  %v1306_v31 = vmul.f32 -1.442695, %v1012_v24  ;;  %v764_v32 = vadd.f32 %v763_v28, %v423_v46 }
  0xec   : > { %1353 = vpow2.f32 %v1305_v22  ;;  %v1017_v33 = vadd.f32 %v1007_v25, %v762_v26  ;;  %v1019_v34 = vadd.f32 %v1007_v25, %v839_v27  ;;  %v841_v35 = vadd.f32 %v840_v29, %v500_v47  ;;  %v909_v36 = vpop.f32.mrf.mxu0  ;;  %v986_v37 = vpop.f32.mrf.mxu1 }
  0xed   : > { %1355 = vpow2.f32 %v1304_v30  ;;  %v1018_v38 = vadd.f32 %v1007_v25, %v764_v32  ;;  %v910_v39 = vadd.f32 %v909_v36, %v569_v48  ;;  %v987_v40 = vadd.f32 %v986_v37, %v646_v49 }
  0xee   : > { %1357 = vpow2.f32 %v1306_v31  ;;  %v1311_v41 = vmul.f32 -1.442695, %v1017_v33  ;;  %v1313_v42 = vmul.f32 -1.442695, %v1019_v34  ;;  %v1020_v43 = vadd.f32 %v1007_v25, %v841_v35  ;;  %v911_v44 = vpop.f32.mrf.mxu0  ;;  %v988_v45 = vpop.f32.mrf.mxu1 }
  0xef   : > { %v1312_v57 = vmul.f32 -1.442695, %v1018_v38  ;;  %v1013_v58 = vadd.f32 %v1002_v56, %v910_v39  ;;  %v1015_v59 = vadd.f32 %v1002_v56, %v987_v40  ;;  %v912_v46 = vadd.f32 %v911_v44, %v571_v50 }
  0xf0   : > { %1359 = vpow2.f32 %v1311_v41  ;;  %v1314_v60 = vmul.f32 -1.442695, %v1020_v43  ;;  %v989_v61 = vadd.f32 %v988_v45, %v648_v51  ;;  %v915_v47 = vpop.f32.mrf.mxu0  ;;  %v992_v62 = vpop.f32.mrf.mxu1 }
  0xf1   : > { %1361 = vpow2.f32 %v1313_v42  ;;  %v1307_v63 = vmul.f32 -1.442695, %v1013_v58  ;;  %v1309_v0 = vmul.f32 -1.442695, %v1015_v59  ;;  %v1014_v48 = vadd.f32 %v1002_v56, %v912_v46 }
  0xf2   : > { %1363 = vpow2.f32 %v1312_v57  ;;  %v1016_v49 = vadd.f32 %v1002_v56, %v989_v61  ;;  %v916_v1 = vadd.f32 %v915_v47, %v575_v52  ;;  %v993_v10 = vadd.f32 %v992_v62, %v652_v53  ;;  %v917_v15 = vpop.f32.mrf.mxu0  ;;  %v994_v20 = vpop.f32.mrf.mxu1 }
  0xf3   : > { %1365 = vpow2.f32 %v1314_v60  ;;  %v1308_v21 = vmul.f32 -1.442695, %v1014_v48  ;;  %v918_v22 = vadd.f32 %v917_v15, %v1667_v54  ;;  %v995_v50 = vadd.f32 %v994_v20, %v1669_v55 }
  0xf4   : > { %1367 = vpow2.f32 %v1307_v63  ;;  %v1310_v51 = vmul.f32 -1.442695, %v1016_v49  ;;  %v1021_v23 = vadd.f32 %v1007_v25, %v916_v1  ;;  %v1023_v24 = vadd.f32 %v1007_v25, %v993_v10 }
  0xf5   : > { %1369 = vpow2.f32 %v1309_v0  ;;  %v1022_v26 = vadd.f32 %v1007_v25, %v918_v22  ;;  %v1024_v53 = vadd.f32 %v1007_v25, %v995_v50 }
  0xf6   : > { %1371 = vpow2.f32 %v1308_v21  ;;  %v1315_v27 = vmul.f32 -1.442695, %v1021_v23  ;;  %v1317_v28 = vmul.f32 -1.442695, %v1023_v24 }
  0xf7   : > { %1373 = vpow2.f32 %v1310_v51  ;;  %v1316_v52 = vmul.f32 -1.442695, %v1022_v26  ;;  %v1318_v33 = vmul.f32 -1.442695, %v1024_v53 }
  0xf8   : > { %v1352_v56 = vpop.eup %1351  ;;  %1375 = vpow2.f32 %v1315_v27 }
  0xf9   : > { %v1354_v29 = vpop.eup %1353  ;;  %v1073_v30 = vadd.f32 1.0, %v1352_v56  ;;  %1377 = vpow2.f32 %v1317_v28 }
  0xfa   : > { %v1356_v54 = vpop.eup %1355  ;;  %v1075_v31 = vadd.f32 1.0, %v1354_v29  ;;  %1379 = vpow2.f32 %v1316_v52 }
  0xfb   : > { %v1358_v55 = vpop.eup %1357  ;;  %1381 = vrcp.f32 %v1073_v30  ;;  %v1074_v32 = vadd.f32 1.0, %v1356_v54 }
  0xfc   : > { %1383 = vrcp.f32 %v1075_v31  ;;  %v1076_v34 = vadd.f32 1.0, %v1358_v55 }
  0xfd   : > { %v1360_v35 = vpop.eup %1359  ;;  %1385 = vrcp.f32 %v1074_v32 }
  0xfe   : > { %v1362_v36 = vpop.eup %1361  ;;  %1387 = vrcp.f32 %v1076_v34  ;;  %v1081_v37 = vadd.f32 1.0, %v1360_v35 }
  0xff   : > { %v1364_v25 = vpop.eup %1363  ;;  %v1083_v38 = vadd.f32 1.0, %v1362_v36  ;;  %1389 = vpow2.f32 %v1318_v33 }
 0x100   : > { %v1366_v39 = vpop.eup %1365  ;;  %1391 = vrcp.f32 %v1081_v37  ;;  %v1082_v40 = vadd.f32 1.0, %v1364_v25 }
 0x101   : > { %v1368_v41 = vpop.eup %1367  ;;  %1393 = vrcp.f32 %v1083_v38  ;;  %v1084_v42 = vadd.f32 1.0, %v1366_v39 }
 0x102   : > { %v1370_v43 = vpop.eup %1369  ;;  %1395 = vrcp.f32 %v1082_v40  ;;  %v1077_v44 = vadd.f32 1.0, %v1368_v41 }
 0x103   : > { %v1372_v45 = vpop.eup %1371  ;;  %1397 = vrcp.f32 %v1084_v42  ;;  %v1079_v57 = vadd.f32 1.0, %v1370_v43 }
 0x104   : > { %v1374_v58 = vpop.eup %1373  ;;  %1399 = vrcp.f32 %v1077_v44  ;;  %v1078_v59 = vadd.f32 1.0, %v1372_v45 }
 0x105   : > { %v1376_v46 = vpop.eup %1375  ;;  %1401 = vrcp.f32 %v1079_v57  ;;  %v1080_v60 = vadd.f32 1.0, %v1374_v58 }
 0x106   : > { %v1378_v61 = vpop.eup %1377  ;;  %1403 = vrcp.f32 %v1078_v59  ;;  %v1085_v47 = vadd.f32 1.0, %v1376_v46 }
 0x107   : > { %v1380_v62 = vpop.eup %1379  ;;  %1405 = vrcp.f32 %v1080_v60  ;;  %v1087_v63 = vadd.f32 1.0, %v1378_v61 }
 0x108   : > { %v1382_v0 = vpop.eup %1381  ;;  %1407 = vrcp.f32 %v1085_v47  ;;  %v1086_v48 = vadd.f32 1.0, %v1380_v62 }
 0x109   : > { %v1384_v49 = vpop.eup %1383  ;;  %v1121_v1 = vmul.f32 %v1382_v0, %v1524_v8  ;;  %1409 = vrcp.f32 %v1087_v63 }
 0x10a   : > { %v1386_v10 = vpop.eup %1385  ;;  %v1123_v15 = vmul.f32 %v1384_v49, %v1527_v9  ;;  %1411 = vrcp.f32 %v1086_v48 }
 0x10b   : > { %v1388_v20 = vpop.eup %1387  ;;  %1137 = vst [vmem:[%s1678_s7] sm:$0xff] %v1121_v1  ;;  %v1122_v21 = vmul.f32 %v1386_v10, %v1516_v6 }
 0x10c   : > { %v1390_v22 = vpop.eup %1389  ;;  %1139 = vst [vmem:[%s1678_s7 + $0x10] sm:$0xff] %v1123_v15  ;;  %v1124_v50 = vmul.f32 %v1388_v20, %v1519_v7 }
 0x10d   : > { %v1392_v51 = vpop.eup %1391  ;;  %1138 = vst [vmem:[%s1678_s7 + $0x8] sm:$0xff] %v1122_v21  ;;  %v1088_v23 = vadd.f32 1.0, %v1390_v22 }
 0x10e   : > { %v1394_v8 = vpop.eup %1393  ;;  %1140 = vst [vmem:[%s1678_s7 + $0x18] sm:$0xff] %v1124_v50  ;;  %v1129_v9 = vmul.f32 %v1392_v51, %v1508_v4 }
 0x10f   : > { %v1396_v24 = vpop.eup %1395  ;;  %v1131_v26 = vmul.f32 %v1394_v8, %v1513_v5  ;;  %1413 = vrcp.f32 %v1088_v23 }
 0x110   : > { %v1398_v6 = vpop.eup %1397  ;;  %1145 = vst [vmem:[%s1678_s7 + $0x40] sm:$0xff] %v1129_v9  ;;  %v1130_v27 = vmul.f32 %v1396_v24, %v1502_v2 }
 0x111   : > { %v1400_v7 = vpop.eup %1399  ;;  %1147 = vst [vmem:[%s1678_s7 + $0x50] sm:$0xff] %v1131_v26  ;;  %v1132_v28 = vmul.f32 %v1398_v6, %v1505_v3 }
 0x112   : > { %v1402_v52 = vpop.eup %1401  ;;  %1146 = vst [vmem:[%s1678_s7 + $0x48] sm:$0xff] %v1130_v27  ;;  %v1125_v4 = vmul.f32 %v1400_v7, %v1566_v18 }
 0x113   : > { %v1404_v53 = vpop.eup %1403  ;;  %1148 = vst [vmem:[%s1678_s7 + $0x58] sm:$0xff] %v1132_v28  ;;  %v1127_v5 = vmul.f32 %v1402_v52, %v1569_v19 }
 0x114   : > { %v1406_v56 = vpop.eup %1405  ;;  %1141 = vst [vmem:[%s1678_s7 + $0x20] sm:$0xff] %v1125_v4  ;;  %v1126_v2 = vmul.f32 %v1404_v53, %v1558_v16 }
 0x115   : > { %v1408_v29 = vpop.eup %1407  ;;  %1143 = vst [vmem:[%s1678_s7 + $0x30] sm:$0xff] %v1127_v5  ;;  %v1128_v3 = vmul.f32 %v1406_v56, %v1561_v17 }
 0x116   : > { %v1410_v30 = vpop.eup %1409  ;;  %1142 = vst [vmem:[%s1678_s7 + $0x28] sm:$0xff] %v1126_v2  ;;  %v1133_v18 = vmul.f32 %v1408_v29, %v1543_v13 }
 0x117   : > { %v1412_v54 = vpop.eup %1411  ;;  %1144 = vst [vmem:[%s1678_s7 + $0x38] sm:$0xff] %v1128_v3  ;;  %v1135_v31 = vmul.f32 %v1410_v30, %v1546_v14 }
 0x118   : > { %1149 = vst [vmem:[%s1678_s7 + $0x60] sm:$0xff] %v1133_v18  ;;  %v1134_v19 = vmul.f32 %v1412_v54, %v1535_v11 }
 0x119   : > { %1151 = vst [vmem:[%s1678_s7 + $0x70] sm:$0xff] %v1135_v31 }
 0x11a   : > { %1150 = vst [vmem:[%s1678_s7 + $0x68] sm:$0xff] %v1134_v19 }
 0x11c   : > { %v1414_v55 = vpop.eup %1413 }
 0x11d   : > { %v1136_v16 = vmul.f32 %v1414_v55, %v1538_v12 }
 0x11f   : > { %1152 = vst [vmem:[%s1678_s7 + $0x78] sm:$0xff] %v1136_v16 }
 0x120 PF: > { %s15_s20 = sadd.s32 1, %s1437_s20   ;;  %s1727_s18 = smov %s1433_s19 }
 0x121   : > { %p12_p5 = scmp.ge.s32.totalorder %s15_s20, 4   ;;  %s1728_s19 = smov %s1730_s21 }
 0x123   :  { %14 = sbr.rel (!%p12_p5) target bundleno = 2 (0x2), region = 76 }

</bundles_post_ra>
